<compile_context>
chip_gen: v7x
topology: tpu7x:2x2x1
jax: 0.10.0
libtpu: 0.0.40
codegen_flags: <defaults>
</compile_context>

<pallas_src>
import functools
import math

import numpy as np

import jax
import jax.numpy as jnp
from jax import lax
from jax.experimental import pallas as pl
from jax.experimental.pallas import tpu as pltpu

EPS = 1e-5
SQRT_2_OVER_PI = math.sqrt(2.0 / math.pi)


def _conv_block_kernel(x_ref, w1_ref, w2_ref, b1_ref, b2_ref, mask_ref,
                       o_ref, slab_ref, *, H, W, group):
    """Fused conv1(+BN1) -> GELU(tanh) -> conv2(+BN2) -> residual.

    x_ref    : (1, C, S)    input activations, S = D*H*W (lane-dense)
    w*_ref   : (C, K)       BN-folded im2col weights, zero-padded to K cols
    b*_ref   : (C, 1)       BN-folded biases
    mask_ref : (27*C, S)    0/1 border masks, rows t*C:(t+1)*C for tap t
    o_ref    : (1, C, S)
    slab_ref : (K, S)       im2col slab scratch, K = round_up(groups*C, 128)
    """
    C, S = x_ref.shape[1], x_ref.shape[2]
    K = slab_ref.shape[0]
    n_groups = -(-27 // group)          # taps per conv, written `group` at a time
    k_rows = n_groups * group * C       # slab rows written by build_slab

    # Dead contraction rows (their weight columns are zero, but keep the MXU
    # away from stale VMEM).  Cheap: <= 40 rows per grid step.
    if k_rows < K:
        slab_ref[k_rows:K, :] = jnp.zeros((K - k_rows, S), slab_ref.dtype)

    def build_slab(src):
        """slab[(kd*9+kh*3+kw)*C + ci, s] = mask * src[ci, (s + off) mod S]."""
        for grp in range(n_groups):
            parts = []
            for j in range(group):
                t = grp * group + j
                if t < 27:
                    kd, kh, kw = t // 9, (t // 3) % 3, t % 3
                    off = (kd - 1) * H * W + (kh - 1) * W + (kw - 1)
                    shift = (-off) % S
                    v = pltpu.roll(src, shift, axis=1) if shift else src
                    # Border mask zeroes every out-of-volume tap, so the
                    # roll's lane wrap-around is harmless.
                    v = v * mask_ref[t * C:(t + 1) * C, :]
                else:                    # phantom tap padding the last pair
                    v = jnp.zeros((C, S), jnp.float32)
                parts.append(v)
            blk = parts[0] if group == 1 else jnp.concatenate(parts, axis=0)
            r0 = grp * group * C
            slab_ref[r0:r0 + group * C, :] = blk.astype(slab_ref.dtype)

    # ---- conv1 + BN1 (folded): one (C,K) @ (K,S) MXU matmul + bias add ----
    build_slab(x_ref[0].astype(jnp.float32))
    y = jnp.dot(w1_ref[...], slab_ref[...], preferred_element_type=jnp.float32)
    y = y + b1_ref[...]

    # ---- GELU, tanh approximation (f32 on the VPU/EUP) ----
    y = 0.5 * y * (1.0 + jnp.tanh(SQRT_2_OVER_PI * (y + 0.044715 * y * y * y)))

    # ---- conv2 + BN2 (folded) ----
    build_slab(y)
    y = jnp.dot(w2_ref[...], slab_ref[...], preferred_element_type=jnp.float32)
    y = y + b2_ref[...]

    # ---- residual add (drop_path = Identity, no layer_scale) ----
    o_ref[0] = (x_ref[0].astype(jnp.float32) + y).astype(o_ref.dtype)


def _fold_bn(w_oidhw, b_conv, bn_w, bn_b, bn_mean, bn_var):
    """Fold eval-mode BatchNorm3d into conv weight/bias (PyTorch OIDHW layout)."""
    scale = bn_w / jnp.sqrt(bn_var + EPS)                       # (Co,)
    w_f = w_oidhw * scale[:, None, None, None, None]
    b_f = (b_conv - bn_mean) * scale + bn_b
    return w_f, b_f


def _pack_weight(w_oidhw, k_pad):
    """(Co,Ci,3,3,3) -> (Co, k_pad) im2col matrix, zero-padded to k_pad cols."""
    co, ci = w_oidhw.shape[0], w_oidhw.shape[1]
    w_mat = jnp.transpose(w_oidhw, (0, 2, 3, 4, 1)).reshape(co, 27 * ci)
    return jnp.pad(w_mat, ((0, 0), (0, k_pad - 27 * ci)))


def _make_border_mask(C, D, H, W):
    """Constant (27*C, S) 0/1 mask: row t*C+ci masks tap t = kd*9+kh*3+kw."""
    S = D * H * W
    pos = np.arange(S)
    d = pos // (H * W)
    h = (pos // W) % H
    w = pos % W
    rows = []
    for kd in range(3):
        for kh in range(3):
            for kw in range(3):
                dd, dh, dw = kd - 1, kh - 1, kw - 1
                ok = ((d + dd >= 0) & (d + dd < D) &
                      (h + dh >= 0) & (h + dh < H) &
                      (w + dw >= 0) & (w + dw < W)).astype(np.float32)
                rows.append(np.broadcast_to(ok[None, :], (C, S)))
    return np.concatenate(rows, axis=0)


def conv_block_3d(x_ncdhw, params, *, mxu_dtype=jnp.bfloat16):
    """ConvBlock3D.forward (NCDHW in, NCDHW out).

    mxu_dtype: dtype of the im2col slab / packed weights fed to the MXU.
      bfloat16 (default) uses the native-bf16 MXU path (v5e/v6e/v7x) with f32
      accumulation (~1e-2 abs error); float32 keeps bit-faithful numerics.
    """
    N, C, D, H, W = x_ncdhw.shape
    S = D * H * W
    x2d = x_ncdhw.reshape(N, C, S)                 # free reshape, no transpose

    w1f, b1f = _fold_bn(params["w1"], params["b1"], params["bn1_w"],
                        params["bn1_b"], params["bn1_m"], params["bn1_v"])
    w2f, b2f = _fold_bn(params["w2"], params["b2"], params["bn2_w"],
                        params["bn2_b"], params["bn2_m"], params["bn2_v"])

    # Store-tile alignment for slab writes: f32 tiles are 8 rows, packed bf16
    # tiles are 16 rows.  Write taps in pairs when a single tap's C rows would
    # only cover part of a tile (e.g. bf16 with C=8 -> 16 rows per store).
    rows_per_tile = 16 if mxu_dtype == jnp.bfloat16 else 8
    if C % rows_per_tile == 0:
        group = 1
    elif (2 * C) % rows_per_tile == 0:
        group = 2
    else:
        group = 1                                   # correct, possibly RMW stores
    n_groups = -(-27 // group)
    k_rows = n_groups * group * C
    k_pad = ((k_rows + 127) // 128) * 128           # contraction, 128-aligned

    w1m = _pack_weight(w1f, k_pad).astype(mxu_dtype)
    w2m = _pack_weight(w2f, k_pad).astype(mxu_dtype)
    b1c = b1f.reshape(C, 1).astype(jnp.float32)
    b2c = b2f.reshape(C, 1).astype(jnp.float32)
    mask = jnp.asarray(_make_border_mask(C, D, H, W))   # (27*C, S) f32 constant

    kernel = functools.partial(_conv_block_kernel, H=H, W=W, group=group)

    out2d = pl.pallas_call(
        kernel,
        out_shape=jax.ShapeDtypeStruct((N, C, S), x_ncdhw.dtype),
        grid=(N,),
        in_specs=[
            pl.BlockSpec((1, C, S), lambda n: (n, 0, 0)),
            pl.BlockSpec((C, k_pad), lambda n: (0, 0)),
            pl.BlockSpec((C, k_pad), lambda n: (0, 0)),
            pl.BlockSpec((C, 1), lambda n: (0, 0)),
            pl.BlockSpec((C, 1), lambda n: (0, 0)),
            pl.BlockSpec((27 * C, S), lambda n: (0, 0)),
        ],
        out_specs=pl.BlockSpec((1, C, S), lambda n: (n, 0, 0)),
        scratch_shapes=[
            pltpu.VMEM((k_pad, S), mxu_dtype),      # im2col slab
        ],
        compiler_params=pltpu.CompilerParams(
            dimension_semantics=("parallel",)),
    )(x2d, w1m, w2m, b1c, b2c, mask)

    return out2d.reshape(N, C, D, H, W)


def _reference(x_ncdhw, params):
    """Pure-JAX reference mirroring the PyTorch module (eval mode)."""
    def conv3d(x, w_oidhw, b):
        y = lax.conv_general_dilated(
            x, w_oidhw, window_strides=(1, 1, 1),
            padding=((1, 1), (1, 1), (1, 1)),
            dimension_numbers=("NCDHW", "OIDHW", "NCDHW"))
        return y + b.reshape(1, -1, 1, 1, 1)

    def bn(x, w, b, m, v):
        sh = (1, -1, 1, 1, 1)
        return (x - m.reshape(sh)) / jnp.sqrt(v.reshape(sh) + EPS) * w.reshape(sh) + b.reshape(sh)

    y = conv3d(x_ncdhw, params["w1"], params["b1"])
    y = bn(y, params["bn1_w"], params["bn1_b"], params["bn1_m"], params["bn1_v"])
    y = jax.nn.gelu(y, approximate=True)
    y = conv3d(y, params["w2"], params["b2"])
    y = bn(y, params["bn2_w"], params["bn2_b"], params["bn2_m"], params["bn2_v"])
    return x_ncdhw + y


def _init_params(key, dim):
    ks = jax.random.split(key, 12)
    scale = 1.0 / math.sqrt(dim * 27)  # ~PyTorch Conv3d default fan-in scaling
    return {
        # conv weights in PyTorch layout (Co, Ci, kd, kh, kw)
        "w1": jax.random.normal(ks[0], (dim, dim, 3, 3, 3), jnp.float32) * scale,
        "b1": jax.random.normal(ks[1], (dim,), jnp.float32) * scale,
        "w2": jax.random.normal(ks[2], (dim, dim, 3, 3, 3), jnp.float32) * scale,
        "b2": jax.random.normal(ks[3], (dim,), jnp.float32) * scale,
        # BatchNorm3d affine params + running stats (eval mode)
        "bn1_w": jax.random.uniform(ks[4], (dim,), jnp.float32, 0.5, 1.5),
        "bn1_b": jax.random.normal(ks[5], (dim,), jnp.float32) * 0.1,
        "bn1_m": jax.random.normal(ks[6], (dim,), jnp.float32) * 0.1,
        "bn1_v": jax.random.uniform(ks[7], (dim,), jnp.float32, 0.5, 1.5),
        "bn2_w": jax.random.uniform(ks[8], (dim,), jnp.float32, 0.5, 1.5),
        "bn2_b": jax.random.normal(ks[9], (dim,), jnp.float32) * 0.1,
        "bn2_m": jax.random.normal(ks[10], (dim,), jnp.float32) * 0.1,
        "bn2_v": jax.random.uniform(ks[11], (dim,), jnp.float32, 0.5, 1.5),
    }


if __name__ == "__main__":
    key = jax.random.PRNGKey(0)
    k_x, k_p = jax.random.split(key)

    N, dim, D, H, W = 2, 8, 8, 8, 8
    x = jax.random.normal(k_x, (N, dim, D, H, W), jnp.float32)  # NCDHW like PyTorch
    params = _init_params(k_p, dim)

    mxu_dtype = jnp.bfloat16          # default fast path (f32 accumulation)
    fwd = jax.jit(functools.partial(conv_block_3d, mxu_dtype=mxu_dtype))
    out = jax.block_until_ready(fwd(x, params))

    ref = _reference(x, params)
    assert out.shape == ref.shape == (N, dim, D, H, W)
    err = float(jnp.max(jnp.abs(out - ref)))
    # bf16 MXU operands with f32 accumulation: ~1e-2 expected; f32 path < 2e-3.
    tol = 2e-3 if mxu_dtype == jnp.float32 else 6e-2
    assert err < tol, f"max abs err = {err}"

    print("KERNEL_OK")
</pallas_src>

<mosaic_0001>
module attributes {stable_mosaic.version = 11 : i64} {
  func.func @_conv_block_kernel(%arg0: i32, %arg1: memref<1x8x512xf32, #tpu.memory_space<vmem>>, %arg2: memref<8x256xbf16, #tpu.memory_space<vmem>>, %arg3: memref<8x256xbf16, #tpu.memory_space<vmem>>, %arg4: memref<8x1xf32, #tpu.memory_space<vmem>>, %arg5: memref<8x1xf32, #tpu.memory_space<vmem>>, %arg6: memref<216x512xf32, #tpu.memory_space<vmem>>, %arg7: memref<1x8x512xf32, #tpu.memory_space<vmem>>, %arg8: memref<256x512xbf16, #tpu.memory_space<vmem>>) attributes {dimension_semantics = [#tpu.dimension_semantics<parallel>], iteration_bounds = array<i64: 2>, scalar_prefetch = 0 : i64, scratch_operands = 1 : i64, tpu.core_type = #tpu.core_type<tc>, window_params = [{transform_indices = @transform_0, window_bounds = array<i64: 1, 8, 512>}, {pipeline_mode = #tpu.pipeline_mode<synchronous>, transform_indices = @transform_1, window_bounds = array<i64: 8, 256>}, {pipeline_mode = #tpu.pipeline_mode<synchronous>, transform_indices = @transform_2, window_bounds = array<i64: 8, 256>}, {pipeline_mode = #tpu.pipeline_mode<synchronous>, transform_indices = @transform_3, window_bounds = array<i64: 8, 1>}, {pipeline_mode = #tpu.pipeline_mode<synchronous>, transform_indices = @transform_4, window_bounds = array<i64: 8, 1>}, {pipeline_mode = #tpu.pipeline_mode<synchronous>, transform_indices = @transform_5, window_bounds = array<i64: 216, 512>}, {transform_indices = @transform_6, window_bounds = array<i64: 1, 8, 512>}]} {
    %cst = arith.constant 0.000000e+00 : bf16
    %0 = vector.broadcast %cst : bf16 to vector<32x512xbf16>
    %c224 = arith.constant 224 : index
    %c0 = arith.constant 0 : index
    %1 = vector.load %arg8[%c224, %c0] : memref<256x512xbf16, #tpu.memory_space<vmem>>, vector<32x512xbf16>
    tpu.vector_store %arg8[%c224, %c0], %0 {strides = array<i32>} : memref<256x512xbf16, #tpu.memory_space<vmem>>, vector<32x512xbf16>,
    %c0_0 = arith.constant 0 : index
    %c0_1 = arith.constant 0 : index
    %c0_2 = arith.constant 0 : index
    %2 = vector.load %arg1[%c0_0, %c0_1, %c0_2] : memref<1x8x512xf32, #tpu.memory_space<vmem>>, vector<1x8x512xf32>
    %3 = vector.shape_cast %2 : vector<1x8x512xf32> to vector<8x512xf32>
    %c73_i32 = arith.constant 73 : i32
    %4 = tpu.dynamic_rotate %3 by %c73_i32 dim 1 : vector<8x512xf32>, i32 -> vector<8x512xf32>
    %c0_3 = arith.constant 0 : index
    %c0_4 = arith.constant 0 : index
    %5 = vector.load %arg6[%c0_3, %c0_4] : memref<216x512xf32, #tpu.memory_space<vmem>>, vector<8x512xf32>
    %6 = arith.mulf %4, %5 : vector<8x512xf32>
    %c72_i32 = arith.constant 72 : i32
    %7 = tpu.dynamic_rotate %3 by %c72_i32 dim 1 : vector<8x512xf32>, i32 -> vector<8x512xf32>
    %c8 = arith.constant 8 : index
    %c0_5 = arith.constant 0 : index
    %8 = vector.load %arg6[%c8, %c0_5] : memref<216x512xf32, #tpu.memory_space<vmem>>, vector<8x512xf32>
    %9 = arith.mulf %7, %8 : vector<8x512xf32>
    %10 = tpu.concatenate %6, %9 in 0 : vector<8x512xf32>, vector<8x512xf32> -> vector<16x512xf32>
    %11 = arith.truncf %10 : vector<16x512xf32> to vector<16x512xbf16>
    %c0_6 = arith.constant 0 : index
    %c0_7 = arith.constant 0 : index
    %12 = vector.load %arg8[%c0_6, %c0_7] : memref<256x512xbf16, #tpu.memory_space<vmem>>, vector<16x512xbf16>
    tpu.vector_store %arg8[%c0_6, %c0_7], %11 {strides = array<i32>} : memref<256x512xbf16, #tpu.memory_space<vmem>>, vector<16x512xbf16>,
    %c71_i32 = arith.constant 71 : i32
    %13 = tpu.dynamic_rotate %3 by %c71_i32 dim 1 : vector<8x512xf32>, i32 -> vector<8x512xf32>
    %c16 = arith.constant 16 : index
    %c0_8 = arith.constant 0 : index
    %14 = vector.load %arg6[%c16, %c0_8] : memref<216x512xf32, #tpu.memory_space<vmem>>, vector<8x512xf32>
    %15 = arith.mulf %13, %14 : vector<8x512xf32>
    %c65_i32 = arith.constant 65 : i32
    %16 = tpu.dynamic_rotate %3 by %c65_i32 dim 1 : vector<8x512xf32>, i32 -> vector<8x512xf32>
    %c24 = arith.constant 24 : index
    %c0_9 = arith.constant 0 : index
    %17 = vector.load %arg6[%c24, %c0_9] : memref<216x512xf32, #tpu.memory_space<vmem>>, vector<8x512xf32>
    %18 = arith.mulf %16, %17 : vector<8x512xf32>
    %19 = tpu.concatenate %15, %18 in 0 : vector<8x512xf32>, vector<8x512xf32> -> vector<16x512xf32>
    %20 = arith.truncf %19 : vector<16x512xf32> to vector<16x512xbf16>
    %c16_10 = arith.constant 16 : index
    %c0_11 = arith.constant 0 : index
    %21 = vector.load %arg8[%c16_10, %c0_11] : memref<256x512xbf16, #tpu.memory_space<vmem>>, vector<16x512xbf16>
    tpu.vector_store %arg8[%c16_10, %c0_11], %20 {strides = array<i32>} : memref<256x512xbf16, #tpu.memory_space<vmem>>, vector<16x512xbf16>,
    %c64_i32 = arith.constant 64 : i32
    %22 = tpu.dynamic_rotate %3 by %c64_i32 dim 1 : vector<8x512xf32>, i32 -> vector<8x512xf32>
    %c32 = arith.constant 32 : index
    %c0_12 = arith.constant 0 : index
    %23 = vector.load %arg6[%c32, %c0_12] : memref<216x512xf32, #tpu.memory_space<vmem>>, vector<8x512xf32>
    %24 = arith.mulf %22, %23 : vector<8x512xf32>
    %c63_i32 = arith.constant 63 : i32
    %25 = tpu.dynamic_rotate %3 by %c63_i32 dim 1 : vector<8x512xf32>, i32 -> vector<8x512xf32>
    %c40 = arith.constant 40 : index
    %c0_13 = arith.constant 0 : index
    %26 = vector.load %arg6[%c40, %c0_13] : memref<216x512xf32, #tpu.memory_space<vmem>>, vector<8x512xf32>
    %27 = arith.mulf %25, %26 : vector<8x512xf32>
    %28 = tpu.concatenate %24, %27 in 0 : vector<8x512xf32>, vector<8x512xf32> -> vector<16x512xf32>
    %29 = arith.truncf %28 : vector<16x512xf32> to vector<16x512xbf16>
    %c32_14 = arith.constant 32 : index
    %c0_15 = arith.constant 0 : index
    %30 = vector.load %arg8[%c32_14, %c0_15] : memref<256x512xbf16, #tpu.memory_space<vmem>>, vector<16x512xbf16>
    tpu.vector_store %arg8[%c32_14, %c0_15], %29 {strides = array<i32>} : memref<256x512xbf16, #tpu.memory_space<vmem>>, vector<16x512xbf16>,
    %c57_i32 = arith.constant 57 : i32
    %31 = tpu.dynamic_rotate %3 by %c57_i32 dim 1 : vector<8x512xf32>, i32 -> vector<8x512xf32>
    %c48 = arith.constant 48 : index
    %c0_16 = arith.constant 0 : index
    %32 = vector.load %arg6[%c48, %c0_16] : memref<216x512xf32, #tpu.memory_space<vmem>>, vector<8x512xf32>
    %33 = arith.mulf %31, %32 : vector<8x512xf32>
    %c56_i32 = arith.constant 56 : i32
    %34 = tpu.dynamic_rotate %3 by %c56_i32 dim 1 : vector<8x512xf32>, i32 -> vector<8x512xf32>
    %c56 = arith.constant 56 : index
    %c0_17 = arith.constant 0 : index
    %35 = vector.load %arg6[%c56, %c0_17] : memref<216x512xf32, #tpu.memory_space<vmem>>, vector<8x512xf32>
    %36 = arith.mulf %34, %35 : vector<8x512xf32>
    %37 = tpu.concatenate %33, %36 in 0 : vector<8x512xf32>, vector<8x512xf32> -> vector<16x512xf32>
    %38 = arith.truncf %37 : vector<16x512xf32> to vector<16x512xbf16>
    %c48_18 = arith.constant 48 : index
    %c0_19 = arith.constant 0 : index
    %39 = vector.load %arg8[%c48_18, %c0_19] : memref<256x512xbf16, #tpu.memory_space<vmem>>, vector<16x512xbf16>
    tpu.vector_store %arg8[%c48_18, %c0_19], %38 {strides = array<i32>} : memref<256x512xbf16, #tpu.memory_space<vmem>>, vector<16x512xbf16>,
    %c55_i32 = arith.constant 55 : i32
    %40 = tpu.dynamic_rotate %3 by %c55_i32 dim 1 : vector<8x512xf32>, i32 -> vector<8x512xf32>
    %c64 = arith.constant 64 : index
    %c0_20 = arith.constant 0 : index
    %41 = vector.load %arg6[%c64, %c0_20] : memref<216x512xf32, #tpu.memory_space<vmem>>, vector<8x512xf32>
    %42 = arith.mulf %40, %41 : vector<8x512xf32>
    %c9_i32 = arith.constant 9 : i32
    %43 = tpu.dynamic_rotate %3 by %c9_i32 dim 1 : vector<8x512xf32>, i32 -> vector<8x512xf32>
    %c72 = arith.constant 72 : index
    %c0_21 = arith.constant 0 : index
    %44 = vector.load %arg6[%c72, %c0_21] : memref<216x512xf32, #tpu.memory_space<vmem>>, vector<8x512xf32>
    %45 = arith.mulf %43, %44 : vector<8x512xf32>
    %46 = tpu.concatenate %42, %45 in 0 : vector<8x512xf32>, vector<8x512xf32> -> vector<16x512xf32>
    %47 = arith.truncf %46 : vector<16x512xf32> to vector<16x512xbf16>
    %c64_22 = arith.constant 64 : index
    %c0_23 = arith.constant 0 : index
    %48 = vector.load %arg8[%c64_22, %c0_23] : memref<256x512xbf16, #tpu.memory_space<vmem>>, vector<16x512xbf16>
    tpu.vector_store %arg8[%c64_22, %c0_23], %47 {strides = array<i32>} : memref<256x512xbf16, #tpu.memory_space<vmem>>, vector<16x512xbf16>,
    %c8_i32 = arith.constant 8 : i32
    %49 = tpu.dynamic_rotate %3 by %c8_i32 dim 1 : vector<8x512xf32>, i32 -> vector<8x512xf32>
    %c80 = arith.constant 80 : index
    %c0_24 = arith.constant 0 : index
    %50 = vector.load %arg6[%c80, %c0_24] : memref<216x512xf32, #tpu.memory_space<vmem>>, vector<8x512xf32>
    %51 = arith.mulf %49, %50 : vector<8x512xf32>
    %c7_i32 = arith.constant 7 : i32
    %52 = tpu.dynamic_rotate %3 by %c7_i32 dim 1 : vector<8x512xf32>, i32 -> vector<8x512xf32>
    %c88 = arith.constant 88 : index
    %c0_25 = arith.constant 0 : index
    %53 = vector.load %arg6[%c88, %c0_25] : memref<216x512xf32, #tpu.memory_space<vmem>>, vector<8x512xf32>
    %54 = arith.mulf %52, %53 : vector<8x512xf32>
    %55 = tpu.concatenate %51, %54 in 0 : vector<8x512xf32>, vector<8x512xf32> -> vector<16x512xf32>
    %56 = arith.truncf %55 : vector<16x512xf32> to vector<16x512xbf16>
    %c80_26 = arith.constant 80 : index
    %c0_27 = arith.constant 0 : index
    %57 = vector.load %arg8[%c80_26, %c0_27] : memref<256x512xbf16, #tpu.memory_space<vmem>>, vector<16x512xbf16>
    tpu.vector_store %arg8[%c80_26, %c0_27], %56 {strides = array<i32>} : memref<256x512xbf16, #tpu.memory_space<vmem>>, vector<16x512xbf16>,
    %c1_i32 = arith.constant 1 : i32
    %58 = tpu.dynamic_rotate %3 by %c1_i32 dim 1 : vector<8x512xf32>, i32 -> vector<8x512xf32>
    %c96 = arith.constant 96 : index
    %c0_28 = arith.constant 0 : index
    %59 = vector.load %arg6[%c96, %c0_28] : memref<216x512xf32, #tpu.memory_space<vmem>>, vector<8x512xf32>
    %60 = arith.mulf %58, %59 : vector<8x512xf32>
    %c104 = arith.constant 104 : index
    %c0_29 = arith.constant 0 : index
    %61 = vector.load %arg6[%c104, %c0_29] : memref<216x512xf32, #tpu.memory_space<vmem>>, vector<8x512xf32>
    %62 = arith.mulf %3, %61 : vector<8x512xf32>
    %63 = tpu.concatenate %60, %62 in 0 : vector<8x512xf32>, vector<8x512xf32> -> vector<16x512xf32>
    %64 = arith.truncf %63 : vector<16x512xf32> to vector<16x512xbf16>
    %c96_30 = arith.constant 96 : index
    %c0_31 = arith.constant 0 : index
    %65 = vector.load %arg8[%c96_30, %c0_31] : memref<256x512xbf16, #tpu.memory_space<vmem>>, vector<16x512xbf16>
    tpu.vector_store %arg8[%c96_30, %c0_31], %64 {strides = array<i32>} : memref<256x512xbf16, #tpu.memory_space<vmem>>, vector<16x512xbf16>,
    %c511_i32 = arith.constant 511 : i32
    %66 = tpu.dynamic_rotate %3 by %c511_i32 dim 1 : vector<8x512xf32>, i32 -> vector<8x512xf32>
    %c112 = arith.constant 112 : index
    %c0_32 = arith.constant 0 : index
    %67 = vector.load %arg6[%c112, %c0_32] : memref<216x512xf32, #tpu.memory_space<vmem>>, vector<8x512xf32>
    %68 = arith.mulf %66, %67 : vector<8x512xf32>
    %c505_i32 = arith.constant 505 : i32
    %69 = tpu.dynamic_rotate %3 by %c505_i32 dim 1 : vector<8x512xf32>, i32 -> vector<8x512xf32>
    %c120 = arith.constant 120 : index
    %c0_33 = arith.constant 0 : index
    %70 = vector.load %arg6[%c120, %c0_33] : memref<216x512xf32, #tpu.memory_space<vmem>>, vector<8x512xf32>
    %71 = arith.mulf %69, %70 : vector<8x512xf32>
    %72 = tpu.concatenate %68, %71 in 0 : vector<8x512xf32>, vector<8x512xf32> -> vector<16x512xf32>
    %73 = arith.truncf %72 : vector<16x512xf32> to vector<16x512xbf16>
    %c112_34 = arith.constant 112 : index
    %c0_35 = arith.constant 0 : index
    %74 = vector.load %arg8[%c112_34, %c0_35] : memref<256x512xbf16, #tpu.memory_space<vmem>>, vector<16x512xbf16>
    tpu.vector_store %arg8[%c112_34, %c0_35], %73 {strides = array<i32>} : memref<256x512xbf16, #tpu.memory_space<vmem>>, vector<16x512xbf16>,
    %c504_i32 = arith.constant 504 : i32
    %75 = tpu.dynamic_rotate %3 by %c504_i32 dim 1 : vector<8x512xf32>, i32 -> vector<8x512xf32>
    %c128 = arith.constant 128 : index
    %c0_36 = arith.constant 0 : index
    %76 = vector.load %arg6[%c128, %c0_36] : memref<216x512xf32, #tpu.memory_space<vmem>>, vector<8x512xf32>
    %77 = arith.mulf %75, %76 : vector<8x512xf32>
    %c503_i32 = arith.constant 503 : i32
    %78 = tpu.dynamic_rotate %3 by %c503_i32 dim 1 : vector<8x512xf32>, i32 -> vector<8x512xf32>
    %c136 = arith.constant 136 : index
    %c0_37 = arith.constant 0 : index
    %79 = vector.load %arg6[%c136, %c0_37] : memref<216x512xf32, #tpu.memory_space<vmem>>, vector<8x512xf32>
    %80 = arith.mulf %78, %79 : vector<8x512xf32>
    %81 = tpu.concatenate %77, %80 in 0 : vector<8x512xf32>, vector<8x512xf32> -> vector<16x512xf32>
    %82 = arith.truncf %81 : vector<16x512xf32> to vector<16x512xbf16>
    %c128_38 = arith.constant 128 : index
    %c0_39 = arith.constant 0 : index
    %83 = vector.load %arg8[%c128_38, %c0_39] : memref<256x512xbf16, #tpu.memory_space<vmem>>, vector<16x512xbf16>
    tpu.vector_store %arg8[%c128_38, %c0_39], %82 {strides = array<i32>} : memref<256x512xbf16, #tpu.memory_space<vmem>>, vector<16x512xbf16>,
    %c457_i32 = arith.constant 457 : i32
    %84 = tpu.dynamic_rotate %3 by %c457_i32 dim 1 : vector<8x512xf32>, i32 -> vector<8x512xf32>
    %c144 = arith.constant 144 : index
    %c0_40 = arith.constant 0 : index
    %85 = vector.load %arg6[%c144, %c0_40] : memref<216x512xf32, #tpu.memory_space<vmem>>, vector<8x512xf32>
    %86 = arith.mulf %84, %85 : vector<8x512xf32>
    %c456_i32 = arith.constant 456 : i32
    %87 = tpu.dynamic_rotate %3 by %c456_i32 dim 1 : vector<8x512xf32>, i32 -> vector<8x512xf32>
    %c152 = arith.constant 152 : index
    %c0_41 = arith.constant 0 : index
    %88 = vector.load %arg6[%c152, %c0_41] : memref<216x512xf32, #tpu.memory_space<vmem>>, vector<8x512xf32>
    %89 = arith.mulf %87, %88 : vector<8x512xf32>
    %90 = tpu.concatenate %86, %89 in 0 : vector<8x512xf32>, vector<8x512xf32> -> vector<16x512xf32>
    %91 = arith.truncf %90 : vector<16x512xf32> to vector<16x512xbf16>
    %c144_42 = arith.constant 144 : index
    %c0_43 = arith.constant 0 : index
    %92 = vector.load %arg8[%c144_42, %c0_43] : memref<256x512xbf16, #tpu.memory_space<vmem>>, vector<16x512xbf16>
    tpu.vector_store %arg8[%c144_42, %c0_43], %91 {strides = array<i32>} : memref<256x512xbf16, #tpu.memory_space<vmem>>, vector<16x512xbf16>,
    %c455_i32 = arith.constant 455 : i32
    %93 = tpu.dynamic_rotate %3 by %c455_i32 dim 1 : vector<8x512xf32>, i32 -> vector<8x512xf32>
    %c160 = arith.constant 160 : index
    %c0_44 = arith.constant 0 : index
    %94 = vector.load %arg6[%c160, %c0_44] : memref<216x512xf32, #tpu.memory_space<vmem>>, vector<8x512xf32>
    %95 = arith.mulf %93, %94 : vector<8x512xf32>
    %c449_i32 = arith.constant 449 : i32
    %96 = tpu.dynamic_rotate %3 by %c449_i32 dim 1 : vector<8x512xf32>, i32 -> vector<8x512xf32>
    %c168 = arith.constant 168 : index
    %c0_45 = arith.constant 0 : index
    %97 = vector.load %arg6[%c168, %c0_45] : memref<216x512xf32, #tpu.memory_space<vmem>>, vector<8x512xf32>
    %98 = arith.mulf %96, %97 : vector<8x512xf32>
    %99 = tpu.concatenate %95, %98 in 0 : vector<8x512xf32>, vector<8x512xf32> -> vector<16x512xf32>
    %100 = arith.truncf %99 : vector<16x512xf32> to vector<16x512xbf16>
    %c160_46 = arith.constant 160 : index
    %c0_47 = arith.constant 0 : index
    %101 = vector.load %arg8[%c160_46, %c0_47] : memref<256x512xbf16, #tpu.memory_space<vmem>>, vector<16x512xbf16>
    tpu.vector_store %arg8[%c160_46, %c0_47], %100 {strides = array<i32>} : memref<256x512xbf16, #tpu.memory_space<vmem>>, vector<16x512xbf16>,
    %c448_i32 = arith.constant 448 : i32
    %102 = tpu.dynamic_rotate %3 by %c448_i32 dim 1 : vector<8x512xf32>, i32 -> vector<8x512xf32>
    %c176 = arith.constant 176 : index
    %c0_48 = arith.constant 0 : index
    %103 = vector.load %arg6[%c176, %c0_48] : memref<216x512xf32, #tpu.memory_space<vmem>>, vector<8x512xf32>
    %104 = arith.mulf %102, %103 : vector<8x512xf32>
    %c447_i32 = arith.constant 447 : i32
    %105 = tpu.dynamic_rotate %3 by %c447_i32 dim 1 : vector<8x512xf32>, i32 -> vector<8x512xf32>
    %c184 = arith.constant 184 : index
    %c0_49 = arith.constant 0 : index
    %106 = vector.load %arg6[%c184, %c0_49] : memref<216x512xf32, #tpu.memory_space<vmem>>, vector<8x512xf32>
    %107 = arith.mulf %105, %106 : vector<8x512xf32>
    %108 = tpu.concatenate %104, %107 in 0 : vector<8x512xf32>, vector<8x512xf32> -> vector<16x512xf32>
    %109 = arith.truncf %108 : vector<16x512xf32> to vector<16x512xbf16>
    %c176_50 = arith.constant 176 : index
    %c0_51 = arith.constant 0 : index
    %110 = vector.load %arg8[%c176_50, %c0_51] : memref<256x512xbf16, #tpu.memory_space<vmem>>, vector<16x512xbf16>
    tpu.vector_store %arg8[%c176_50, %c0_51], %109 {strides = array<i32>} : memref<256x512xbf16, #tpu.memory_space<vmem>>, vector<16x512xbf16>,
    %c441_i32 = arith.constant 441 : i32
    %111 = tpu.dynamic_rotate %3 by %c441_i32 dim 1 : vector<8x512xf32>, i32 -> vector<8x512xf32>
    %c192 = arith.constant 192 : index
    %c0_52 = arith.constant 0 : index
    %112 = vector.load %arg6[%c192, %c0_52] : memref<216x512xf32, #tpu.memory_space<vmem>>, vector<8x512xf32>
    %113 = arith.mulf %111, %112 : vector<8x512xf32>
    %c440_i32 = arith.constant 440 : i32
    %114 = tpu.dynamic_rotate %3 by %c440_i32 dim 1 : vector<8x512xf32>, i32 -> vector<8x512xf32>
    %c200 = arith.constant 200 : index
    %c0_53 = arith.constant 0 : index
    %115 = vector.load %arg6[%c200, %c0_53] : memref<216x512xf32, #tpu.memory_space<vmem>>, vector<8x512xf32>
    %116 = arith.mulf %114, %115 : vector<8x512xf32>
    %117 = tpu.concatenate %113, %116 in 0 : vector<8x512xf32>, vector<8x512xf32> -> vector<16x512xf32>
    %118 = arith.truncf %117 : vector<16x512xf32> to vector<16x512xbf16>
    %c192_54 = arith.constant 192 : index
    %c0_55 = arith.constant 0 : index
    %119 = vector.load %arg8[%c192_54, %c0_55] : memref<256x512xbf16, #tpu.memory_space<vmem>>, vector<16x512xbf16>
    tpu.vector_store %arg8[%c192_54, %c0_55], %118 {strides = array<i32>} : memref<256x512xbf16, #tpu.memory_space<vmem>>, vector<16x512xbf16>,
    %c439_i32 = arith.constant 439 : i32
    %120 = tpu.dynamic_rotate %3 by %c439_i32 dim 1 : vector<8x512xf32>, i32 -> vector<8x512xf32>
    %c208 = arith.constant 208 : index
    %c0_56 = arith.constant 0 : index
    %121 = vector.load %arg6[%c208, %c0_56] : memref<216x512xf32, #tpu.memory_space<vmem>>, vector<8x512xf32>
    %122 = arith.mulf %120, %121 : vector<8x512xf32>
    %cst_57 = arith.constant 0.000000e+00 : f32
    %123 = vector.broadcast %cst_57 : f32 to vector<8x512xf32>
    %124 = tpu.concatenate %122, %123 in 0 : vector<8x512xf32>, vector<8x512xf32> -> vector<16x512xf32>
    %125 = arith.truncf %124 : vector<16x512xf32> to vector<16x512xbf16>
    %c208_58 = arith.constant 208 : index
    %c0_59 = arith.constant 0 : index
    %126 = vector.load %arg8[%c208_58, %c0_59] : memref<256x512xbf16, #tpu.memory_space<vmem>>, vector<16x512xbf16>
    tpu.vector_store %arg8[%c208_58, %c0_59], %125 {strides = array<i32>} : memref<256x512xbf16, #tpu.memory_space<vmem>>, vector<16x512xbf16>,
    %c0_60 = arith.constant 0 : index
    %c0_61 = arith.constant 0 : index
    %127 = vector.load %arg2[%c0_60, %c0_61] : memref<8x256xbf16, #tpu.memory_space<vmem>>, vector<8x256xbf16>
    %c0_62 = arith.constant 0 : index
    %c0_63 = arith.constant 0 : index
    %128 = vector.load %arg8[%c0_62, %c0_63] : memref<256x512xbf16, #tpu.memory_space<vmem>>, vector<256x512xbf16>
    %cst_64 = arith.constant dense<0.000000e+00> : vector<8x512xf32>
    %129 = tpu.matmul %127, %128, %cst_64 {dimension_numbers = #tpu.dot_dimension_numbers<[1], [0], [0], [1], [0, 0, 1, 1], [], []>} : vector<8x256xbf16>, vector<256x512xbf16>, vector<8x512xf32> -> vector<8x512xf32>
    %c0_65 = arith.constant 0 : index
    %c0_66 = arith.constant 0 : index
    %130 = vector.load %arg4[%c0_65, %c0_66] : memref<8x1xf32, #tpu.memory_space<vmem>>, vector<8x1xf32>
    %131 = vector.broadcast %130 : vector<8x1xf32> to vector<8x512xf32>
    %132 = arith.addf %129, %131 : vector<8x512xf32>
    %cst_67 = arith.constant 5.000000e-01 : f32
    %133 = vector.broadcast %cst_67 : f32 to vector<8x512xf32>
    %134 = arith.mulf %133, %132 : vector<8x512xf32>
    %cst_68 = arith.constant 4.471500e-02 : f32
    %135 = vector.broadcast %cst_68 : f32 to vector<8x512xf32>
    %136 = arith.mulf %135, %132 : vector<8x512xf32>
    %137 = arith.mulf %136, %132 : vector<8x512xf32>
    %138 = arith.mulf %137, %132 : vector<8x512xf32>
    %139 = arith.addf %132, %138 : vector<8x512xf32>
    %cst_69 = arith.constant 0.797884583 : f32
    %140 = vector.broadcast %cst_69 : f32 to vector<8x512xf32>
    %141 = arith.mulf %140, %139 : vector<8x512xf32>
    %142 = math.tanh %141 : vector<8x512xf32>
    %cst_70 = arith.constant 1.000000e+00 : f32
    %143 = vector.broadcast %cst_70 : f32 to vector<8x512xf32>
    %144 = arith.addf %143, %142 : vector<8x512xf32>
    %145 = arith.mulf %134, %144 : vector<8x512xf32>
    %c73_i32_71 = arith.constant 73 : i32
    %146 = tpu.dynamic_rotate %145 by %c73_i32_71 dim 1 : vector<8x512xf32>, i32 -> vector<8x512xf32>
    %c0_72 = arith.constant 0 : index
    %c0_73 = arith.constant 0 : index
    %147 = vector.load %arg6[%c0_72, %c0_73] : memref<216x512xf32, #tpu.memory_space<vmem>>, vector<8x512xf32>
    %148 = arith.mulf %146, %147 : vector<8x512xf32>
    %c72_i32_74 = arith.constant 72 : i32
    %149 = tpu.dynamic_rotate %145 by %c72_i32_74 dim 1 : vector<8x512xf32>, i32 -> vector<8x512xf32>
    %c8_75 = arith.constant 8 : index
    %c0_76 = arith.constant 0 : index
    %150 = vector.load %arg6[%c8_75, %c0_76] : memref<216x512xf32, #tpu.memory_space<vmem>>, vector<8x512xf32>
    %151 = arith.mulf %149, %150 : vector<8x512xf32>
    %152 = tpu.concatenate %148, %151 in 0 : vector<8x512xf32>, vector<8x512xf32> -> vector<16x512xf32>
    %153 = arith.truncf %152 : vector<16x512xf32> to vector<16x512xbf16>
    %c0_77 = arith.constant 0 : index
    %c0_78 = arith.constant 0 : index
    %154 = vector.load %arg8[%c0_77, %c0_78] : memref<256x512xbf16, #tpu.memory_space<vmem>>, vector<16x512xbf16>
    tpu.vector_store %arg8[%c0_77, %c0_78], %153 {strides = array<i32>} : memref<256x512xbf16, #tpu.memory_space<vmem>>, vector<16x512xbf16>,
    %c71_i32_79 = arith.constant 71 : i32
    %155 = tpu.dynamic_rotate %145 by %c71_i32_79 dim 1 : vector<8x512xf32>, i32 -> vector<8x512xf32>
    %c16_80 = arith.constant 16 : index
    %c0_81 = arith.constant 0 : index
    %156 = vector.load %arg6[%c16_80, %c0_81] : memref<216x512xf32, #tpu.memory_space<vmem>>, vector<8x512xf32>
    %157 = arith.mulf %155, %156 : vector<8x512xf32>
    %c65_i32_82 = arith.constant 65 : i32
    %158 = tpu.dynamic_rotate %145 by %c65_i32_82 dim 1 : vector<8x512xf32>, i32 -> vector<8x512xf32>
    %c24_83 = arith.constant 24 : index
    %c0_84 = arith.constant 0 : index
    %159 = vector.load %arg6[%c24_83, %c0_84] : memref<216x512xf32, #tpu.memory_space<vmem>>, vector<8x512xf32>
    %160 = arith.mulf %158, %159 : vector<8x512xf32>
    %161 = tpu.concatenate %157, %160 in 0 : vector<8x512xf32>, vector<8x512xf32> -> vector<16x512xf32>
    %162 = arith.truncf %161 : vector<16x512xf32> to vector<16x512xbf16>
    %c16_85 = arith.constant 16 : index
    %c0_86 = arith.constant 0 : index
    %163 = vector.load %arg8[%c16_85, %c0_86] : memref<256x512xbf16, #tpu.memory_space<vmem>>, vector<16x512xbf16>
    tpu.vector_store %arg8[%c16_85, %c0_86], %162 {strides = array<i32>} : memref<256x512xbf16, #tpu.memory_space<vmem>>, vector<16x512xbf16>,
    %c64_i32_87 = arith.constant 64 : i32
    %164 = tpu.dynamic_rotate %145 by %c64_i32_87 dim 1 : vector<8x512xf32>, i32 -> vector<8x512xf32>
    %c32_88 = arith.constant 32 : index
    %c0_89 = arith.constant 0 : index
    %165 = vector.load %arg6[%c32_88, %c0_89] : memref<216x512xf32, #tpu.memory_space<vmem>>, vector<8x512xf32>
    %166 = arith.mulf %164, %165 : vector<8x512xf32>
    %c63_i32_90 = arith.constant 63 : i32
    %167 = tpu.dynamic_rotate %145 by %c63_i32_90 dim 1 : vector<8x512xf32>, i32 -> vector<8x512xf32>
    %c40_91 = arith.constant 40 : index
    %c0_92 = arith.constant 0 : index
    %168 = vector.load %arg6[%c40_91, %c0_92] : memref<216x512xf32, #tpu.memory_space<vmem>>, vector<8x512xf32>
    %169 = arith.mulf %167, %168 : vector<8x512xf32>
    %170 = tpu.concatenate %166, %169 in 0 : vector<8x512xf32>, vector<8x512xf32> -> vector<16x512xf32>
    %171 = arith.truncf %170 : vector<16x512xf32> to vector<16x512xbf16>
    %c32_93 = arith.constant 32 : index
    %c0_94 = arith.constant 0 : index
    %172 = vector.load %arg8[%c32_93, %c0_94] : memref<256x512xbf16, #tpu.memory_space<vmem>>, vector<16x512xbf16>
    tpu.vector_store %arg8[%c32_93, %c0_94], %171 {strides = array<i32>} : memref<256x512xbf16, #tpu.memory_space<vmem>>, vector<16x512xbf16>,
    %c57_i32_95 = arith.constant 57 : i32
    %173 = tpu.dynamic_rotate %145 by %c57_i32_95 dim 1 : vector<8x512xf32>, i32 -> vector<8x512xf32>
    %c48_96 = arith.constant 48 : index
    %c0_97 = arith.constant 0 : index
    %174 = vector.load %arg6[%c48_96, %c0_97] : memref<216x512xf32, #tpu.memory_space<vmem>>, vector<8x512xf32>
    %175 = arith.mulf %173, %174 : vector<8x512xf32>
    %c56_i32_98 = arith.constant 56 : i32
    %176 = tpu.dynamic_rotate %145 by %c56_i32_98 dim 1 : vector<8x512xf32>, i32 -> vector<8x512xf32>
    %c56_99 = arith.constant 56 : index
    %c0_100 = arith.constant 0 : index
    %177 = vector.load %arg6[%c56_99, %c0_100] : memref<216x512xf32, #tpu.memory_space<vmem>>, vector<8x512xf32>
    %178 = arith.mulf %176, %177 : vector<8x512xf32>
    %179 = tpu.concatenate %175, %178 in 0 : vector<8x512xf32>, vector<8x512xf32> -> vector<16x512xf32>
    %180 = arith.truncf %179 : vector<16x512xf32> to vector<16x512xbf16>
    %c48_101 = arith.constant 48 : index
    %c0_102 = arith.constant 0 : index
    %181 = vector.load %arg8[%c48_101, %c0_102] : memref<256x512xbf16, #tpu.memory_space<vmem>>, vector<16x512xbf16>
    tpu.vector_store %arg8[%c48_101, %c0_102], %180 {strides = array<i32>} : memref<256x512xbf16, #tpu.memory_space<vmem>>, vector<16x512xbf16>,
    %c55_i32_103 = arith.constant 55 : i32
    %182 = tpu.dynamic_rotate %145 by %c55_i32_103 dim 1 : vector<8x512xf32>, i32 -> vector<8x512xf32>
    %c64_104 = arith.constant 64 : index
    %c0_105 = arith.constant 0 : index
    %183 = vector.load %arg6[%c64_104, %c0_105] : memref<216x512xf32, #tpu.memory_space<vmem>>, vector<8x512xf32>
    %184 = arith.mulf %182, %183 : vector<8x512xf32>
    %c9_i32_106 = arith.constant 9 : i32
    %185 = tpu.dynamic_rotate %145 by %c9_i32_106 dim 1 : vector<8x512xf32>, i32 -> vector<8x512xf32>
    %c72_107 = arith.constant 72 : index
    %c0_108 = arith.constant 0 : index
    %186 = vector.load %arg6[%c72_107, %c0_108] : memref<216x512xf32, #tpu.memory_space<vmem>>, vector<8x512xf32>
    %187 = arith.mulf %185, %186 : vector<8x512xf32>
    %188 = tpu.concatenate %184, %187 in 0 : vector<8x512xf32>, vector<8x512xf32> -> vector<16x512xf32>
    %189 = arith.truncf %188 : vector<16x512xf32> to vector<16x512xbf16>
    %c64_109 = arith.constant 64 : index
    %c0_110 = arith.constant 0 : index
    %190 = vector.load %arg8[%c64_109, %c0_110] : memref<256x512xbf16, #tpu.memory_space<vmem>>, vector<16x512xbf16>
    tpu.vector_store %arg8[%c64_109, %c0_110], %189 {strides = array<i32>} : memref<256x512xbf16, #tpu.memory_space<vmem>>, vector<16x512xbf16>,
    %c8_i32_111 = arith.constant 8 : i32
    %191 = tpu.dynamic_rotate %145 by %c8_i32_111 dim 1 : vector<8x512xf32>, i32 -> vector<8x512xf32>
    %c80_112 = arith.constant 80 : index
    %c0_113 = arith.constant 0 : index
    %192 = vector.load %arg6[%c80_112, %c0_113] : memref<216x512xf32, #tpu.memory_space<vmem>>, vector<8x512xf32>
    %193 = arith.mulf %191, %192 : vector<8x512xf32>
    %c7_i32_114 = arith.constant 7 : i32
    %194 = tpu.dynamic_rotate %145 by %c7_i32_114 dim 1 : vector<8x512xf32>, i32 -> vector<8x512xf32>
    %c88_115 = arith.constant 88 : index
    %c0_116 = arith.constant 0 : index
    %195 = vector.load %arg6[%c88_115, %c0_116] : memref<216x512xf32, #tpu.memory_space<vmem>>, vector<8x512xf32>
    %196 = arith.mulf %194, %195 : vector<8x512xf32>
    %197 = tpu.concatenate %193, %196 in 0 : vector<8x512xf32>, vector<8x512xf32> -> vector<16x512xf32>
    %198 = arith.truncf %197 : vector<16x512xf32> to vector<16x512xbf16>
    %c80_117 = arith.constant 80 : index
    %c0_118 = arith.constant 0 : index
    %199 = vector.load %arg8[%c80_117, %c0_118] : memref<256x512xbf16, #tpu.memory_space<vmem>>, vector<16x512xbf16>
    tpu.vector_store %arg8[%c80_117, %c0_118], %198 {strides = array<i32>} : memref<256x512xbf16, #tpu.memory_space<vmem>>, vector<16x512xbf16>,
    %c1_i32_119 = arith.constant 1 : i32
    %200 = tpu.dynamic_rotate %145 by %c1_i32_119 dim 1 : vector<8x512xf32>, i32 -> vector<8x512xf32>
    %c96_120 = arith.constant 96 : index
    %c0_121 = arith.constant 0 : index
    %201 = vector.load %arg6[%c96_120, %c0_121] : memref<216x512xf32, #tpu.memory_space<vmem>>, vector<8x512xf32>
    %202 = arith.mulf %200, %201 : vector<8x512xf32>
    %c104_122 = arith.constant 104 : index
    %c0_123 = arith.constant 0 : index
    %203 = vector.load %arg6[%c104_122, %c0_123] : memref<216x512xf32, #tpu.memory_space<vmem>>, vector<8x512xf32>
    %204 = arith.mulf %145, %203 : vector<8x512xf32>
    %205 = tpu.concatenate %202, %204 in 0 : vector<8x512xf32>, vector<8x512xf32> -> vector<16x512xf32>
    %206 = arith.truncf %205 : vector<16x512xf32> to vector<16x512xbf16>
    %c96_124 = arith.constant 96 : index
    %c0_125 = arith.constant 0 : index
    %207 = vector.load %arg8[%c96_124, %c0_125] : memref<256x512xbf16, #tpu.memory_space<vmem>>, vector<16x512xbf16>
    tpu.vector_store %arg8[%c96_124, %c0_125], %206 {strides = array<i32>} : memref<256x512xbf16, #tpu.memory_space<vmem>>, vector<16x512xbf16>,
    %c511_i32_126 = arith.constant 511 : i32
    %208 = tpu.dynamic_rotate %145 by %c511_i32_126 dim 1 : vector<8x512xf32>, i32 -> vector<8x512xf32>
    %c112_127 = arith.constant 112 : index
    %c0_128 = arith.constant 0 : index
    %209 = vector.load %arg6[%c112_127, %c0_128] : memref<216x512xf32, #tpu.memory_space<vmem>>, vector<8x512xf32>
    %210 = arith.mulf %208, %209 : vector<8x512xf32>
    %c505_i32_129 = arith.constant 505 : i32
    %211 = tpu.dynamic_rotate %145 by %c505_i32_129 dim 1 : vector<8x512xf32>, i32 -> vector<8x512xf32>
    %c120_130 = arith.constant 120 : index
    %c0_131 = arith.constant 0 : index
    %212 = vector.load %arg6[%c120_130, %c0_131] : memref<216x512xf32, #tpu.memory_space<vmem>>, vector<8x512xf32>
    %213 = arith.mulf %211, %212 : vector<8x512xf32>
    %214 = tpu.concatenate %210, %213 in 0 : vector<8x512xf32>, vector<8x512xf32> -> vector<16x512xf32>
    %215 = arith.truncf %214 : vector<16x512xf32> to vector<16x512xbf16>
    %c112_132 = arith.constant 112 : index
    %c0_133 = arith.constant 0 : index
    %216 = vector.load %arg8[%c112_132, %c0_133] : memref<256x512xbf16, #tpu.memory_space<vmem>>, vector<16x512xbf16>
    tpu.vector_store %arg8[%c112_132, %c0_133], %215 {strides = array<i32>} : memref<256x512xbf16, #tpu.memory_space<vmem>>, vector<16x512xbf16>,
    %c504_i32_134 = arith.constant 504 : i32
    %217 = tpu.dynamic_rotate %145 by %c504_i32_134 dim 1 : vector<8x512xf32>, i32 -> vector<8x512xf32>
    %c128_135 = arith.constant 128 : index
    %c0_136 = arith.constant 0 : index
    %218 = vector.load %arg6[%c128_135, %c0_136] : memref<216x512xf32, #tpu.memory_space<vmem>>, vector<8x512xf32>
    %219 = arith.mulf %217, %218 : vector<8x512xf32>
    %c503_i32_137 = arith.constant 503 : i32
    %220 = tpu.dynamic_rotate %145 by %c503_i32_137 dim 1 : vector<8x512xf32>, i32 -> vector<8x512xf32>
    %c136_138 = arith.constant 136 : index
    %c0_139 = arith.constant 0 : index
    %221 = vector.load %arg6[%c136_138, %c0_139] : memref<216x512xf32, #tpu.memory_space<vmem>>, vector<8x512xf32>
    %222 = arith.mulf %220, %221 : vector<8x512xf32>
    %223 = tpu.concatenate %219, %222 in 0 : vector<8x512xf32>, vector<8x512xf32> -> vector<16x512xf32>
    %224 = arith.truncf %223 : vector<16x512xf32> to vector<16x512xbf16>
    %c128_140 = arith.constant 128 : index
    %c0_141 = arith.constant 0 : index
    %225 = vector.load %arg8[%c128_140, %c0_141] : memref<256x512xbf16, #tpu.memory_space<vmem>>, vector<16x512xbf16>
    tpu.vector_store %arg8[%c128_140, %c0_141], %224 {strides = array<i32>} : memref<256x512xbf16, #tpu.memory_space<vmem>>, vector<16x512xbf16>,
    %c457_i32_142 = arith.constant 457 : i32
    %226 = tpu.dynamic_rotate %145 by %c457_i32_142 dim 1 : vector<8x512xf32>, i32 -> vector<8x512xf32>
    %c144_143 = arith.constant 144 : index
    %c0_144 = arith.constant 0 : index
    %227 = vector.load %arg6[%c144_143, %c0_144] : memref<216x512xf32, #tpu.memory_space<vmem>>, vector<8x512xf32>
    %228 = arith.mulf %226, %227 : vector<8x512xf32>
    %c456_i32_145 = arith.constant 456 : i32
    %229 = tpu.dynamic_rotate %145 by %c456_i32_145 dim 1 : vector<8x512xf32>, i32 -> vector<8x512xf32>
    %c152_146 = arith.constant 152 : index
    %c0_147 = arith.constant 0 : index
    %230 = vector.load %arg6[%c152_146, %c0_147] : memref<216x512xf32, #tpu.memory_space<vmem>>, vector<8x512xf32>
    %231 = arith.mulf %229, %230 : vector<8x512xf32>
    %232 = tpu.concatenate %228, %231 in 0 : vector<8x512xf32>, vector<8x512xf32> -> vector<16x512xf32>
    %233 = arith.truncf %232 : vector<16x512xf32> to vector<16x512xbf16>
    %c144_148 = arith.constant 144 : index
    %c0_149 = arith.constant 0 : index
    %234 = vector.load %arg8[%c144_148, %c0_149] : memref<256x512xbf16, #tpu.memory_space<vmem>>, vector<16x512xbf16>
    tpu.vector_store %arg8[%c144_148, %c0_149], %233 {strides = array<i32>} : memref<256x512xbf16, #tpu.memory_space<vmem>>, vector<16x512xbf16>,
    %c455_i32_150 = arith.constant 455 : i32
    %235 = tpu.dynamic_rotate %145 by %c455_i32_150 dim 1 : vector<8x512xf32>, i32 -> vector<8x512xf32>
    %c160_151 = arith.constant 160 : index
    %c0_152 = arith.constant 0 : index
    %236 = vector.load %arg6[%c160_151, %c0_152] : memref<216x512xf32, #tpu.memory_space<vmem>>, vector<8x512xf32>
    %237 = arith.mulf %235, %236 : vector<8x512xf32>
    %c449_i32_153 = arith.constant 449 : i32
    %238 = tpu.dynamic_rotate %145 by %c449_i32_153 dim 1 : vector<8x512xf32>, i32 -> vector<8x512xf32>
    %c168_154 = arith.constant 168 : index
    %c0_155 = arith.constant 0 : index
    %239 = vector.load %arg6[%c168_154, %c0_155] : memref<216x512xf32, #tpu.memory_space<vmem>>, vector<8x512xf32>
    %240 = arith.mulf %238, %239 : vector<8x512xf32>
    %241 = tpu.concatenate %237, %240 in 0 : vector<8x512xf32>, vector<8x512xf32> -> vector<16x512xf32>
    %242 = arith.truncf %241 : vector<16x512xf32> to vector<16x512xbf16>
    %c160_156 = arith.constant 160 : index
    %c0_157 = arith.constant 0 : index
    %243 = vector.load %arg8[%c160_156, %c0_157] : memref<256x512xbf16, #tpu.memory_space<vmem>>, vector<16x512xbf16>
    tpu.vector_store %arg8[%c160_156, %c0_157], %242 {strides = array<i32>} : memref<256x512xbf16, #tpu.memory_space<vmem>>, vector<16x512xbf16>,
    %c448_i32_158 = arith.constant 448 : i32
    %244 = tpu.dynamic_rotate %145 by %c448_i32_158 dim 1 : vector<8x512xf32>, i32 -> vector<8x512xf32>
    %c176_159 = arith.constant 176 : index
    %c0_160 = arith.constant 0 : index
    %245 = vector.load %arg6[%c176_159, %c0_160] : memref<216x512xf32, #tpu.memory_space<vmem>>, vector<8x512xf32>
    %246 = arith.mulf %244, %245 : vector<8x512xf32>
    %c447_i32_161 = arith.constant 447 : i32
    %247 = tpu.dynamic_rotate %145 by %c447_i32_161 dim 1 : vector<8x512xf32>, i32 -> vector<8x512xf32>
    %c184_162 = arith.constant 184 : index
    %c0_163 = arith.constant 0 : index
    %248 = vector.load %arg6[%c184_162, %c0_163] : memref<216x512xf32, #tpu.memory_space<vmem>>, vector<8x512xf32>
    %249 = arith.mulf %247, %248 : vector<8x512xf32>
    %250 = tpu.concatenate %246, %249 in 0 : vector<8x512xf32>, vector<8x512xf32> -> vector<16x512xf32>
    %251 = arith.truncf %250 : vector<16x512xf32> to vector<16x512xbf16>
    %c176_164 = arith.constant 176 : index
    %c0_165 = arith.constant 0 : index
    %252 = vector.load %arg8[%c176_164, %c0_165] : memref<256x512xbf16, #tpu.memory_space<vmem>>, vector<16x512xbf16>
    tpu.vector_store %arg8[%c176_164, %c0_165], %251 {strides = array<i32>} : memref<256x512xbf16, #tpu.memory_space<vmem>>, vector<16x512xbf16>,
    %c441_i32_166 = arith.constant 441 : i32
    %253 = tpu.dynamic_rotate %145 by %c441_i32_166 dim 1 : vector<8x512xf32>, i32 -> vector<8x512xf32>
    %c192_167 = arith.constant 192 : index
    %c0_168 = arith.constant 0 : index
    %254 = vector.load %arg6[%c192_167, %c0_168] : memref<216x512xf32, #tpu.memory_space<vmem>>, vector<8x512xf32>
    %255 = arith.mulf %253, %254 : vector<8x512xf32>
    %c440_i32_169 = arith.constant 440 : i32
    %256 = tpu.dynamic_rotate %145 by %c440_i32_169 dim 1 : vector<8x512xf32>, i32 -> vector<8x512xf32>
    %c200_170 = arith.constant 200 : index
    %c0_171 = arith.constant 0 : index
    %257 = vector.load %arg6[%c200_170, %c0_171] : memref<216x512xf32, #tpu.memory_space<vmem>>, vector<8x512xf32>
    %258 = arith.mulf %256, %257 : vector<8x512xf32>
    %259 = tpu.concatenate %255, %258 in 0 : vector<8x512xf32>, vector<8x512xf32> -> vector<16x512xf32>
    %260 = arith.truncf %259 : vector<16x512xf32> to vector<16x512xbf16>
    %c192_172 = arith.constant 192 : index
    %c0_173 = arith.constant 0 : index
    %261 = vector.load %arg8[%c192_172, %c0_173] : memref<256x512xbf16, #tpu.memory_space<vmem>>, vector<16x512xbf16>
    tpu.vector_store %arg8[%c192_172, %c0_173], %260 {strides = array<i32>} : memref<256x512xbf16, #tpu.memory_space<vmem>>, vector<16x512xbf16>,
    %c439_i32_174 = arith.constant 439 : i32
    %262 = tpu.dynamic_rotate %145 by %c439_i32_174 dim 1 : vector<8x512xf32>, i32 -> vector<8x512xf32>
    %c208_175 = arith.constant 208 : index
    %c0_176 = arith.constant 0 : index
    %263 = vector.load %arg6[%c208_175, %c0_176] : memref<216x512xf32, #tpu.memory_space<vmem>>, vector<8x512xf32>
    %264 = arith.mulf %262, %263 : vector<8x512xf32>
    %cst_177 = arith.constant 0.000000e+00 : f32
    %265 = vector.broadcast %cst_177 : f32 to vector<8x512xf32>
    %266 = tpu.concatenate %264, %265 in 0 : vector<8x512xf32>, vector<8x512xf32> -> vector<16x512xf32>
    %267 = arith.truncf %266 : vector<16x512xf32> to vector<16x512xbf16>
    %c208_178 = arith.constant 208 : index
    %c0_179 = arith.constant 0 : index
    %268 = vector.load %arg8[%c208_178, %c0_179] : memref<256x512xbf16, #tpu.memory_space<vmem>>, vector<16x512xbf16>
    tpu.vector_store %arg8[%c208_178, %c0_179], %267 {strides = array<i32>} : memref<256x512xbf16, #tpu.memory_space<vmem>>, vector<16x512xbf16>,
    %c0_180 = arith.constant 0 : index
    %c0_181 = arith.constant 0 : index
    %269 = vector.load %arg3[%c0_180, %c0_181] : memref<8x256xbf16, #tpu.memory_space<vmem>>, vector<8x256xbf16>
    %c0_182 = arith.constant 0 : index
    %c0_183 = arith.constant 0 : index
    %270 = vector.load %arg8[%c0_182, %c0_183] : memref<256x512xbf16, #tpu.memory_space<vmem>>, vector<256x512xbf16>
    %cst_184 = arith.constant dense<0.000000e+00> : vector<8x512xf32>
    %271 = tpu.matmul %269, %270, %cst_184 {dimension_numbers = #tpu.dot_dimension_numbers<[1], [0], [0], [1], [0, 0, 1, 1], [], []>} : vector<8x256xbf16>, vector<256x512xbf16>, vector<8x512xf32> -> vector<8x512xf32>
    %c0_185 = arith.constant 0 : index
    %c0_186 = arith.constant 0 : index
    %272 = vector.load %arg5[%c0_185, %c0_186] : memref<8x1xf32, #tpu.memory_space<vmem>>, vector<8x1xf32>
    %273 = vector.broadcast %272 : vector<8x1xf32> to vector<8x512xf32>
    %274 = arith.addf %271, %273 : vector<8x512xf32>
    %c0_187 = arith.constant 0 : index
    %c0_188 = arith.constant 0 : index
    %c0_189 = arith.constant 0 : index
    %275 = vector.load %arg1[%c0_187, %c0_188, %c0_189] : memref<1x8x512xf32, #tpu.memory_space<vmem>>, vector<1x8x512xf32>
    %276 = vector.shape_cast %275 : vector<1x8x512xf32> to vector<8x512xf32>
    %277 = arith.addf %276, %274 : vector<8x512xf32>
    %c0_190 = arith.constant 0 : index
    %c0_191 = arith.constant 0 : index
    %c0_192 = arith.constant 0 : index
    %278 = vector.load %arg7[%c0_190, %c0_191, %c0_192] : memref<1x8x512xf32, #tpu.memory_space<vmem>>, vector<1x8x512xf32>
    %279 = vector.shape_cast %278 : vector<1x8x512xf32> to vector<8x512xf32>
    %280 = vector.shape_cast %277 : vector<8x512xf32> to vector<1x8x512xf32>
    tpu.vector_store %arg7[%c0_190, %c0_191, %c0_192], %280 {strides = array<i32>} : memref<1x8x512xf32, #tpu.memory_space<vmem>>, vector<1x8x512xf32>,
    return
  }
  func.func @transform_0(%arg0: i32) -> (i32, i32, i32) {
    %c0_i32 = arith.constant 0 : i32
    %c0_i32_0 = arith.constant 0 : i32
    %c0_i32_1 = arith.constant 0 : i32
    return %arg0, %c0_i32, %c0_i32_0 : i32, i32, i32
  }
  func.func @transform_1(%arg0: i32) -> (i32, i32) {
    %c0_i32 = arith.constant 0 : i32
    %c0_i32_0 = arith.constant 0 : i32
    %c0_i32_1 = arith.constant 0 : i32
    return %c0_i32, %c0_i32_0 : i32, i32
  }
  func.func @transform_2(%arg0: i32) -> (i32, i32) {
    %c0_i32 = arith.constant 0 : i32
    %c0_i32_0 = arith.constant 0 : i32
    %c0_i32_1 = arith.constant 0 : i32
    return %c0_i32, %c0_i32_0 : i32, i32
  }
  func.func @transform_3(%arg0: i32) -> (i32, i32) {
    %c0_i32 = arith.constant 0 : i32
    %c0_i32_0 = arith.constant 0 : i32
    %c0_i32_1 = arith.constant 0 : i32
    return %c0_i32, %c0_i32_0 : i32, i32
  }
  func.func @transform_4(%arg0: i32) -> (i32, i32) {
    %c0_i32 = arith.constant 0 : i32
    %c0_i32_0 = arith.constant 0 : i32
    %c0_i32_1 = arith.constant 0 : i32
    return %c0_i32, %c0_i32_0 : i32, i32
  }
  func.func @transform_5(%arg0: i32) -> (i32, i32) {
    %c0_i32 = arith.constant 0 : i32
    %c0_i32_0 = arith.constant 0 : i32
    %c0_i32_1 = arith.constant 0 : i32
    return %c0_i32, %c0_i32_0 : i32, i32
  }
  func.func @transform_6(%arg0: i32) -> (i32, i32, i32) {
    %c0_i32 = arith.constant 0 : i32
    %c0_i32_0 = arith.constant 0 : i32
    %c0_i32_1 = arith.constant 0 : i32
    return %arg0, %c0_i32, %c0_i32_0 : i32, i32, i32
  }
}

</mosaic_0001>

<bundles_post_ra>
// kernel: conv_block_3d.1
= control target key start
LH: loop header
LB: loop body
LE: loop exit
PB: predicated region body
PF: predicated region fallthrough
CT: control target
= control target key end

     0   :  { %s1890_s21 = smov 0   ;;  %s3527_s0 = inlined_call_operand.vmem [shape: f32[2,8,512], index: 0, kind: input, shape index: {}]   ;;  %s3528_s1 = inlined_call_operand.vmem [shape: bf16[8,256], index: 1, kind: input, shape index: {}]   ;;  %s3529_s2 = inlined_call_operand.vmem [shape: bf16[8,256], index: 2, kind: input, shape index: {}]   ;;  %s3530_s3 = inlined_call_operand.vmem [shape: f32[8,1], index: 3, kind: input, shape index: {}]   ;;  %s3531_s4 = inlined_call_operand.vmem [shape: f32[8,1], index: 4, kind: input, shape index: {}]   ;;  %s3532_s5 = inlined_call_operand.vmem [shape: f32[216,512], index: 5, kind: input, shape index: {}]   ;;  %s3533_s6 = inlined_call_operand.vmem [shape: f32[2,8,512], index: 6, kind: output, shape index: {}]  }
   0x1 LB: > { %s1771_s22 = sadd.s32 4294967295, %s1834_s21   ;;  %p1775_p0 = scmp.ge.s32.totalorder %s1834_s21, 1  ;;  %s1834_s21 = sphi %s1890_s21, %s16_s21  }
   0x2   : > { %p212_p1 = scmp.lt.s32.totalorder %s1834_s21, 3 }
   0x4   : > { %p213_p2 = pnand %p1775_p0, %p212_p1 }
   0x6   : > { %216 = sbr.rel (%p213_p2) target bundleno = 1033 (0x409), region = 44 }
   0xd   : > { %p242_p3 = scmp.lt.s32.totalorder %s1771_s22, 1  ;;  %s1836_s27 = smov 73   ;;  %v273_v4 = vlaneseq  ;;  %v281_v11 = vld [vmem:[%s3532_s5 + $0x8] sm:$0xff]  ;;  %v704_v13 = vld [vmem:[%s3532_s5 + $0x240] sm:$0xff]  ;;  %v707_v15 = vld [vmem:[%s3532_s5 + $0x258] sm:$0xff] }
   0xe   : > { %s1837_s28 = smov 72   ;;  %s1838_s29 = smov 71   ;;  %v302_v12 = vld [vmem:[%s3532_s5 + $0x28] sm:$0xff]  ;;  %v712_v14 = vld [vmem:[%s3532_s5 + $0x260] sm:$0xff]  ;;  %v283_v25 = vld [vmem:[%s3532_s5 + $0x18] sm:$0xff] }
   0xf   : > { %s3628_s22 = smov (!%p242_p3, %s1771_s22), 1  ;;  %s1839_s30 = smov 65   ;;  %v2036_v5 = vand.u32 127, %v273_v4  ;;  %v705_v17 = vld [vmem:[%s3532_s5 + $0x248] sm:$0xff]  ;;  %v280_v23 = vld [vmem:[%s3532_s5] sm:$0xff]  ;;  %v706_v29 = vld [vmem:[%s3532_s5 + $0x250] sm:$0xff] }
  0x10   : > { %s3534_s23 = sshll.u32 %s3628_s22, 5  ;;  %s1840_s7 = smov 64   ;;  %v282_v30 = vld [vmem:[%s3532_s5 + $0x10] sm:$0xff]  ;;  %v715_v33 = vld [vmem:[%s3532_s5 + $0x278] sm:$0xff]  ;;  %v713_v34 = vld [vmem:[%s3532_s5 + $0x268] sm:$0xff] }
  0x11   : > { %s1906_s26 = scalar_lea.vmem %s3527_s0, %s3534_s23  ;;  %s1841_s8 = smov 63   ;;  %vm275_vm0 = vcmp.lt.s32.totalorder %v2036_v5, 73  ;;  %vm296_vm1 = vcmp.lt.s32.totalorder %v2036_v5, 72  ;;  %v301_v35 = vld [vmem:[%s3532_s5 + $0x20] sm:$0xff]  ;;  %v304_v41 = vld [vmem:[%s3532_s5 + $0x38] sm:$0xff]  ;;  %v714_v42 = vld [vmem:[%s3532_s5 + $0x270] sm:$0xff] }
  0x12   : > { %v1909_v0 = vld [vmem:[%s1906_s26 + $0x10] sm:$0xff]  ;;  %v1912_v1 = vld [vmem:[%s1906_s26] sm:$0xff]  ;;  %v1919_v2 = vld [vmem:[%s1906_s26 + $0x18] sm:$0xff]  ;;  %s1842_s9 = smov 57   ;;  %s1843_s10 = smov 56   ;;  %vm325_vm2 = vcmp.lt.s32.totalorder %v2036_v5, 71 }
  0x13   : > { %269 = vrot.lane.b32.xlu1 %v1909_v0, %s1836_s27  ;;  %265 = vrot.lane.b32.xlu0 %v1912_v1, %s1836_s27  ;;  %v1922_v3 = vld [vmem:[%s1906_s26 + $0x8] sm:$0xff]  ;;  %s1844_s11 = smov 55   ;;  %s1845_s12 = smov 9   ;;  %v303_v43 = vld [vmem:[%s3532_s5 + $0x30] sm:$0xff]  ;;  %vm346_vm3 = vcmp.lt.s32.totalorder %v2036_v5, 65  ;;  %vm375_vm4 = vcmp.lt.s32.totalorder %v2036_v5, 64 }
  0x14   : > { %s3543_s13 = smov 8   ;;  %s3541_s14 = smov 7   ;;  %vm396_vm5 = vcmp.lt.s32.totalorder %v2036_v5, 63  ;;  %vm425_vm6 = vcmp.lt.s32.totalorder %v2036_v5, 57  ;;  %vm446_vm7 = vcmp.lt.s32.totalorder %v2036_v5, 56  ;;  %vm475_vm8 = vcmp.lt.s32.totalorder %v2036_v5, 55 }
  0x15   : > { %s3539_s15 = smov 1   ;;  %s3537_s16 = smov 127   ;;  %vm496_vm9 = vcmp.lt.s32.totalorder %v2036_v5, 9  ;;  %vm525_vm10 = vcmp.lt.s32.totalorder %v2036_v5, 8  ;;  %vm546_vm11 = vcmp.lt.s32.totalorder %v2036_v5, 7  ;;  %vm575_vm12 = vcmp.lt.s32.totalorder %v2036_v5, 1 }
  0x16   : > { %s3535_s17 = smov 121   ;;  %s1851_s18 = smov 120   ;;  %vm3551_vm13 = vcmp.lt.s32.totalorder %v2036_v5, 121  ;;  %vm612_vm14 = vcmp.lt.s32.totalorder %v2036_v5, 127  ;;  %vm683_vm15 = vcmp.lt.s32.totalorder %v2036_v5, 119 }
  0x17   : > { %271 = vrot.lane.b32.xlu1 %v1919_v2, %s1836_s27  ;;  %267 = vrot.lane.b32.xlu0 %v1922_v3, %s1836_s27  ;;  %s3545_s23 = smov 119   ;;  %s3626_s25 = sshll.u32 %s3628_s22, 5 }
  0x1b   : > { %290 = vrot.lane.b32.xlu1 %v1922_v3, %s1837_s28  ;;  %288 = vrot.lane.b32.xlu0 %v1912_v1, %s1837_s28 }
  0x1f   : > { %294 = vrot.lane.b32.xlu1 %v1919_v2, %s1837_s28  ;;  %292 = vrot.lane.b32.xlu0 %v1909_v0, %s1837_s28 }
  0x23   : > { %319 = vrot.lane.b32.xlu1 %v1922_v3, %s1838_s29  ;;  %317 = vrot.lane.b32.xlu0 %v1912_v1, %s1838_s29 }
  0x27   : > { %323 = vrot.lane.b32.xlu1 %v1919_v2, %s1838_s29  ;;  %321 = vrot.lane.b32.xlu0 %v1909_v0, %s1838_s29 }
  0x2b   : > { %340 = vrot.lane.b32.xlu1 %v1922_v3, %s1839_s30  ;;  %338 = vrot.lane.b32.xlu0 %v1912_v1, %s1839_s30 }
  0x2f   : > { %344 = vrot.lane.b32.xlu1 %v1919_v2, %s1839_s30  ;;  %342 = vrot.lane.b32.xlu0 %v1909_v0, %s1839_s30 }
  0x33   : > { %369 = vrot.lane.b32.xlu1 %v1922_v3, %s1840_s7  ;;  %367 = vrot.lane.b32.xlu0 %v1912_v1, %s1840_s7 }
  0x37   : > { %373 = vrot.lane.b32.xlu1 %v1919_v2, %s1840_s7  ;;  %371 = vrot.lane.b32.xlu0 %v1909_v0, %s1840_s7 }
  0x3b   : > { %390 = vrot.lane.b32.xlu1 %v1922_v3, %s1841_s8  ;;  %388 = vrot.lane.b32.xlu0 %v1912_v1, %s1841_s8 }
  0x3f   : > { %394 = vrot.lane.b32.xlu1 %v1919_v2, %s1841_s8  ;;  %392 = vrot.lane.b32.xlu0 %v1909_v0, %s1841_s8 }
  0x43   : > { %419 = vrot.lane.b32.xlu1 %v1922_v3, %s1842_s9  ;;  %417 = vrot.lane.b32.xlu0 %v1912_v1, %s1842_s9 }
  0x47   : > { %423 = vrot.lane.b32.xlu1 %v1919_v2, %s1842_s9  ;;  %421 = vrot.lane.b32.xlu0 %v1909_v0, %s1842_s9 }
  0x4b   : > { %440 = vrot.lane.b32.xlu1 %v1922_v3, %s1843_s10  ;;  %438 = vrot.lane.b32.xlu0 %v1912_v1, %s1843_s10 }
  0x4f   : > { %444 = vrot.lane.b32.xlu1 %v1919_v2, %s1843_s10  ;;  %442 = vrot.lane.b32.xlu0 %v1909_v0, %s1843_s10 }
  0x53   : > { %469 = vrot.lane.b32.xlu1 %v1922_v3, %s1844_s11  ;;  %467 = vrot.lane.b32.xlu0 %v1912_v1, %s1844_s11 }
  0x57   : > { %473 = vrot.lane.b32.xlu1 %v1919_v2, %s1844_s11  ;;  %471 = vrot.lane.b32.xlu0 %v1909_v0, %s1844_s11 }
  0x5b   : > { %490 = vrot.lane.b32.xlu1 %v1922_v3, %s1845_s12  ;;  %488 = vrot.lane.b32.xlu0 %v1912_v1, %s1845_s12 }
  0x5f   : > { %494 = vrot.lane.b32.xlu1 %v1919_v2, %s1845_s12  ;;  %492 = vrot.lane.b32.xlu0 %v1909_v0, %s1845_s12 }
  0x63   : > { %519 = vrot.lane.b32.xlu1 %v1922_v3, %s3543_s13  ;;  %517 = vrot.lane.b32.xlu0 %v1912_v1, %s3543_s13 }
  0x67   : > { %523 = vrot.lane.b32.xlu1 %v1919_v2, %s3543_s13  ;;  %521 = vrot.lane.b32.xlu0 %v1909_v0, %s3543_s13 }
  0x6b   : > { %540 = vrot.lane.b32.xlu1 %v1922_v3, %s3541_s14  ;;  %538 = vrot.lane.b32.xlu0 %v1912_v1, %s3541_s14 }
  0x6f   : > { %544 = vrot.lane.b32.xlu1 %v1919_v2, %s3541_s14  ;;  %542 = vrot.lane.b32.xlu0 %v1909_v0, %s3541_s14 }
  0x73   : > { %569 = vrot.lane.b32.xlu1 %v1922_v3, %s3539_s15  ;;  %567 = vrot.lane.b32.xlu0 %v1912_v1, %s3539_s15 }
  0x77   : > { %573 = vrot.lane.b32.xlu1 %v1919_v2, %s3539_s15  ;;  %571 = vrot.lane.b32.xlu0 %v1909_v0, %s3539_s15 }
  0x7b   : > { %606 = vrot.lane.b32.xlu1 %v1922_v3, %s3537_s16  ;;  %604 = vrot.lane.b32.xlu0 %v1912_v1, %s3537_s16 }
  0x7f   : > { %610 = vrot.lane.b32.xlu1 %v1919_v2, %s3537_s16  ;;  %608 = vrot.lane.b32.xlu0 %v1909_v0, %s3537_s16 }
  0x83   : > { %627 = vrot.lane.b32.xlu1 %v1922_v3, %s3535_s17  ;;  %625 = vrot.lane.b32.xlu0 %v1912_v1, %s3535_s17 }
  0x85   : > { %v270_v6 = vpop.permute.xlu1 %269  ;;  %v266_v7 = vpop.permute.xlu0 %265 }
  0x87   : > { %631 = vrot.lane.b32.xlu1 %v1919_v2, %s3535_s17  ;;  %629 = vrot.lane.b32.xlu0 %v1909_v0, %s3535_s17 }
  0x89   : > { %v272_v8 = vpop.permute.xlu1 %271  ;;  %v268_v9 = vpop.permute.xlu0 %267 }
  0x8a   : > { %v278_v10 = vsel %vm275_vm0, %v266_v7, %v268_v9  ;;  %v279_v16 = vsel %vm275_vm0, %v272_v8, %v266_v7  ;;  %v277_v18 = vsel %vm275_vm0, %v268_v9, %v270_v6  ;;  %v276_v24 = vsel %vm275_vm0, %v270_v6, %v272_v8  ;;  %v331_v7 = vld [vmem:[%s3532_s5 + $0x48] sm:$0xff]  ;;  %v728_v9 = vld [vmem:[%s3532_s5 + $0x280] sm:$0xff] }
  0x8b   : > { %656 = vrot.lane.b32.xlu1 %v1922_v3, %s1851_s18  ;;  %654 = vrot.lane.b32.xlu0 %v1912_v1, %s1851_s18  ;;  %v285_v21 = vmul.f32 %v281_v11, %v278_v10  ;;  %v2086_v27 = vmul.f32 %v704_v13, %v278_v10  ;;  %v2096_v31 = vmul.f32 %v707_v15, %v279_v16  ;;  %v352_v10 = vld [vmem:[%s3532_s5 + $0x68] sm:$0xff]  ;;  %v736_v11 = vld [vmem:[%s3532_s5 + $0x2a0] sm:$0xff] }
  0x8c   : > { %v2098_v32 = vmul.f32 %v705_v17, %v277_v18  ;;  %v284_v39 = vmul.f32 %v280_v23, %v279_v16  ;;  %v287_v40 = vmul.f32 %v283_v25, %v276_v24  ;;  %v2126_v48 = vmul.f32 %v706_v29, %v276_v24  ;;  %v731_v17 = vld [vmem:[%s3532_s5 + $0x298] sm:$0xff]  ;;  %v729_v23 = vld [vmem:[%s3532_s5 + $0x288] sm:$0xff]  ;;  %v351_v29 = vld [vmem:[%s3532_s5 + $0x60] sm:$0xff] }
  0x8d   : > { %v291_v19 = vpop.permute.xlu1 %290  ;;  %v289_v20 = vpop.permute.xlu0 %288  ;;  %v286_v54 = vmul.f32 %v282_v30, %v277_v18  ;;  %v332_v18 = vld [vmem:[%s3532_s5 + $0x50] sm:$0xff] }
  0x8e   : > { %v299_v22 = vsel %vm296_vm1, %v289_v20, %v291_v19 }
  0x8f   : > { %660 = vrot.lane.b32.xlu1 %v1919_v2, %s1851_s18  ;;  %658 = vrot.lane.b32.xlu0 %v1909_v0, %s1851_s18  ;;  %v306_v26 = vmul.f32 %v302_v12, %v299_v22  ;;  %v2088_v28 = vmul.f32 %v712_v14, %v299_v22  ;;  %v330_v12 = vld [vmem:[%s3532_s5 + $0x40] sm:$0xff]  ;;  %v333_v22 = vld [vmem:[%s3532_s5 + $0x58] sm:$0xff] }
  0x91   : > { %v295_v36 = vpop.permute.xlu1 %294  ;;  %v293_v37 = vpop.permute.xlu0 %292  ;;  %v310_v38 = vpack.c.bf16 %v306_v26, %v285_v21 }
  0x92   : > { %v300_v45 = vsel %vm296_vm1, %v295_v36, %v289_v20  ;;  %v298_v46 = vsel %vm296_vm1, %v291_v19, %v293_v37  ;;  %v297_v47 = vsel %vm296_vm1, %v293_v37, %v295_v36  ;;  %v730_v37 = vld [vmem:[%s3532_s5 + $0x290] sm:$0xff] }
  0x93   : > { %v2128_v49 = vmul.f32 %v715_v33, %v300_v45  ;;  %v2130_v50 = vmul.f32 %v713_v34, %v298_v46  ;;  %677 = vrot.lane.b32.xlu1 %v1922_v3, %s3545_s23  ;;  %675 = vrot.lane.b32.xlu0 %v1912_v1, %s3545_s23  ;;  %v305_v51 = vmul.f32 %v301_v35, %v300_v45  ;;  %v739_v33 = vld [vmem:[%s3532_s5 + $0x2b8] sm:$0xff]  ;;  %v353_v34 = vld [vmem:[%s3532_s5 + $0x70] sm:$0xff] }
  0x94   : > { %894 = vmatprep.subr.bf16.mxu0 %v310_v38  ;;  %v308_v52 = vmul.f32 %v304_v41, %v297_v47  ;;  %v2136_v53 = vmul.f32 %v714_v42, %v297_v47  ;;  %v307_v55 = vmul.f32 %v303_v43, %v298_v46  ;;  %v354_v35 = vld [vmem:[%s3532_s5 + $0x78] sm:$0xff]  ;;  %v738_v41 = vld [vmem:[%s3532_s5 + $0x2b0] sm:$0xff] }
  0x95   : > { %v320_v56 = vpop.permute.xlu1 %319  ;;  %v318_v57 = vpop.permute.xlu0 %317  ;;  %v309_v58 = vpack.c.bf16 %v305_v51, %v284_v39 }
  0x96   : > { %v312_v61 = vpack.c.bf16 %v308_v52, %v287_v40  ;;  %v311_v62 = vpack.c.bf16 %v307_v55, %v286_v54  ;;  %v328_v8 = vsel %vm325_vm2, %v318_v57, %v320_v56  ;;  %v737_v40 = vld [vmem:[%s3532_s5 + $0x2a8] sm:$0xff] }
  0x97   : > { %681 = vrot.lane.b32.xlu1 %v1919_v2, %s3545_s23  ;;  %679 = vrot.lane.b32.xlu0 %v1909_v0, %s3545_s23  ;;  %v335_v16 = vmul.f32 %v331_v7, %v328_v8  ;;  %v2179_v21 = vmul.f32 %v728_v9, %v328_v8 }
  0x98   : > { %895 = vmatpush1.bf16.msra.mxu0 %v309_v58  ;;  %935 = vmatprep.subr.bf16.mxu1 %v312_v61 }
  0x99   : > { %936 = vmatpush1.bf16.msra.mxu1 %v311_v62  ;;  %v324_v4 = vpop.permute.xlu1 %323  ;;  %v322_v6 = vpop.permute.xlu0 %321 }
  0x9a   : > { %v329_v13 = vsel %vm325_vm2, %v324_v4, %v318_v57  ;;  %v327_v19 = vsel %vm325_vm2, %v320_v56, %v322_v6  ;;  %v326_v24 = vsel %vm325_vm2, %v322_v6, %v324_v4  ;;  %v2235_v6 = vld [vmem:[%s3528_s1] sm:$0xff] }
  0x9b   : > { %v334_v30 = vmul.f32 %v330_v12, %v329_v13  ;;  %v2203_v36 = vmul.f32 %v731_v17, %v329_v13  ;;  %v336_v38 = vmul.f32 %v332_v18, %v327_v19  ;;  %v337_v46 = vmul.f32 %v333_v22, %v326_v24  ;;  %3561 = vst [vmem:[#allocation3_spill] sm:$0xff] %v2235_v6 }
  0x9c   : > { %v2224_v58 = vmul.f32 %v729_v23, %v327_v19  ;;  %v2226_v61 = vmul.f32 %v730_v37, %v326_v24  ;;  %v1853_v17 = vmov 0   ;;  %v752_v23 = vld [vmem:[%s3532_s5 + $0x2c0] sm:$0xff]  ;;  %v402_v24 = vld [vmem:[%s3532_s5 + $0xa8] sm:$0xff]  ;;  %v755_v37 = vld [vmem:[%s3532_s5 + $0x2d8] sm:$0xff] }
  0x9d   : > { %v341_v14 = vpop.permute.xlu1 %340  ;;  %v339_v15 = vpop.permute.xlu0 %338  ;;  %1815 = vset.pattern.permute.xlu0 %v1853_v17 }
  0x9e   : > { %v349_v20 = vsel %vm346_vm3, %v339_v15, %v341_v14 }
  0x9f   : > { %v356_v25 = vmul.f32 %v352_v10, %v349_v20  ;;  %v2189_v26 = vmul.f32 %v736_v11, %v349_v20  ;;  %v381_v20 = vld [vmem:[%s3532_s5 + $0x88] sm:$0xff] }
  0xa1   : > { %v345_v39 = vpop.permute.xlu1 %344  ;;  %v343_v42 = vpop.permute.xlu0 %342  ;;  %v360_v43 = vpack.c.bf16 %v356_v25, %v335_v16  ;;  %v881_v16 = vld [vmem:[%s3530_s3] sm:$0xff] }
  0xa2   : > { %v350_v47 = vsel %vm346_vm3, %v345_v39, %v339_v15  ;;  %v347_v51 = vsel %vm346_vm3, %v343_v42, %v345_v39  ;;  %v348_v52 = vsel %vm346_vm3, %v341_v14, %v343_v42  ;;  %v1781_v15 = vcombine.high %v2235_v6, %v2235_v6  ;;  %884 = vperm.xlu0 %1815, %v881_v16   ;;  %v760_v25 = vld [vmem:[%s3532_s5 + $0x2e0] sm:$0xff]  ;;  %v383_v42 = vld [vmem:[%s3532_s5 + $0x98] sm:$0xff]  ;;  %v762_v16 = vld [vmem:[%s3532_s5 + $0x2f0] sm:$0xff] }
  0xa3   : > { %v355_v54 = vmul.f32 %v351_v29, %v350_v47  ;;  %v2222_v55 = vmul.f32 %v739_v33, %v350_v47  ;;  %v357_v56 = vmul.f32 %v353_v34, %v348_v52  ;;  %v358_v57 = vmul.f32 %v354_v35, %v347_v51  ;;  %896 = vmatprep.subr.bf16.mxu0 %v360_v43  ;;  %v380_v29 = vld [vmem:[%s3532_s5 + $0x80] sm:$0xff]  ;;  %v753_v43 = vld [vmem:[%s3532_s5 + $0x2c8] sm:$0xff] }
  0xa4   : > { %v2228_v62 = vmul.f32 %v737_v40, %v348_v52  ;;  %v2230_v4 = vmul.f32 %v738_v41, %v347_v51  ;;  %926 = vmatprep.mubr.bf16.mxu0 %v1781_v15  ;;  %967 = vmatprep.mubr.bf16.mxu1 %v1781_v15  ;;  %v401_v52 = vld [vmem:[%s3532_s5 + $0xa0] sm:$0xff]  ;;  %v761_v15 = vld [vmem:[%s3532_s5 + $0x2e8] sm:$0xff] }
  0xa5   : > { %v370_v7 = vpop.permute.xlu1 %369  ;;  %v368_v8 = vpop.permute.xlu0 %367  ;;  %v359_v9 = vpack.c.bf16 %v355_v54, %v334_v30  ;;  %v362_v10 = vpack.c.bf16 %v358_v57, %v337_v46  ;;  %v361_v11 = vpack.c.bf16 %v357_v56, %v336_v38  ;;  %v382_v38 = vld [vmem:[%s3532_s5 + $0x90] sm:$0xff]  ;;  %v763_v56 = vld [vmem:[%s3532_s5 + $0x2f8] sm:$0xff] }
  0xa6   : > { %v378_v22 = vsel %vm375_vm4, %v368_v8, %v370_v7  ;;  %v403_v57 = vld [vmem:[%s3532_s5 + $0xb0] sm:$0xff] }
  0xa7   : > { %897 = vmatpush1.bf16.msra.mxu0 %v359_v9  ;;  %937 = vmatprep.subr.bf16.mxu1 %v362_v10  ;;  %v385_v35 = vmul.f32 %v381_v20, %v378_v22  ;;  %v2279_v41 = vmul.f32 %v752_v23, %v378_v22  ;;  %v754_v9 = vld [vmem:[%s3532_s5 + $0x2d0] sm:$0xff] }
  0xa8   : > { %938 = vmatpush1.bf16.msra.mxu1 %v361_v11 }
  0xa9   : > { %v374_v18 = vpop.permute.xlu1 %373  ;;  %v372_v19 = vpop.permute.xlu0 %371 }
  0xaa   : > { %v379_v30 = vsel %vm375_vm4, %v374_v18, %v368_v8  ;;  %v377_v39 = vsel %vm375_vm4, %v370_v7, %v372_v19  ;;  %v376_v46 = vsel %vm375_vm4, %v372_v19, %v374_v18  ;;  %v404_v7 = vld [vmem:[%s3532_s5 + $0xb8] sm:$0xff] }
  0xab   : > { %v384_v54 = vmul.f32 %v380_v29, %v379_v30  ;;  %v2303_v8 = vmul.f32 %v755_v37, %v379_v30  ;;  %v386_v10 = vmul.f32 %v382_v38, %v377_v39  ;;  %v387_v20 = vmul.f32 %v383_v42, %v376_v46 }
  0xac   : > { %v2326_v38 = vmul.f32 %v754_v9, %v376_v46  ;;  %v430_v9 = vld [vmem:[%s3532_s5 + $0xc0] sm:$0xff] }
  0xad   : > { %v391_v33 = vpop.permute.xlu1 %390  ;;  %v389_v34 = vpop.permute.xlu0 %388 }
  0xae   : > { %v399_v40 = vsel %vm396_vm5, %v389_v34, %v391_v33 }
  0xaf   : > { %v406_v47 = vmul.f32 %v402_v24, %v399_v40  ;;  %v2289_v51 = vmul.f32 %v760_v25, %v399_v40 }
  0xb1   : > { %v395_v11 = vpop.permute.xlu1 %394  ;;  %v393_v17 = vpop.permute.xlu0 %392  ;;  %v410_v18 = vpack.c.bf16 %v406_v47, %v385_v35  ;;  %v2324_v35 = vmul.f32 %v753_v43, %v377_v39 }
  0xb2   : > { %v400_v22 = vsel %vm396_vm5, %v395_v11, %v389_v34  ;;  %v397_v23 = vsel %vm396_vm5, %v393_v17, %v395_v11  ;;  %v398_v24 = vsel %vm396_vm5, %v391_v33, %v393_v17 }
  0xb3   : > { %v405_v25 = vmul.f32 %v401_v52, %v400_v22  ;;  %v2322_v29 = vmul.f32 %v763_v56, %v400_v22  ;;  %v407_v30 = vmul.f32 %v403_v57, %v398_v24  ;;  %v408_v37 = vmul.f32 %v404_v7, %v397_v23  ;;  %898 = vmatprep.subr.bf16.mxu0 %v410_v18  ;;  %v776_v57 = vld [vmem:[%s3532_s5 + $0x300] sm:$0xff]  ;;  %v452_v7 = vld [vmem:[%s3532_s5 + $0xe8] sm:$0xff]  ;;  %v779_v18 = vld [vmem:[%s3532_s5 + $0x318] sm:$0xff] }
  0xb4   : > { %v2328_v40 = vmul.f32 %v761_v15, %v398_v24  ;;  %v2330_v42 = vmul.f32 %v762_v16, %v397_v23  ;;  %v433_v24 = vld [vmem:[%s3532_s5 + $0xd8] sm:$0xff] }
  0xb5   : > { %v420_v34 = vpop.permute.xlu1 %419  ;;  %v418_v47 = vpop.permute.xlu0 %417  ;;  %v409_v11 = vpack.c.bf16 %v405_v25, %v384_v54  ;;  %v412_v19 = vpack.c.bf16 %v408_v37, %v387_v20  ;;  %v411_v14 = vpack.c.bf16 %v407_v30, %v386_v10  ;;  %v431_v54 = vld [vmem:[%s3532_s5 + $0xc8] sm:$0xff] }
  0xb6   : > { %v428_v56 = vsel %vm425_vm6, %v418_v47, %v420_v34  ;;  %v777_v25 = vld [vmem:[%s3532_s5 + $0x308] sm:$0xff] }
  0xb7   : > { %899 = vmatpush1.bf16.msra.mxu0 %v409_v11  ;;  %939 = vmatprep.subr.bf16.mxu1 %v412_v19  ;;  %v435_v17 = vmul.f32 %v431_v54, %v428_v56  ;;  %v432_v19 = vld [vmem:[%s3532_s5 + $0xd0] sm:$0xff]  ;;  %v2369_v23 = vmul.f32 %v776_v57, %v428_v56  ;;  %v787_v54 = vld [vmem:[%s3532_s5 + $0x338] sm:$0xff] }
  0xb8   : > { %940 = vmatpush1.bf16.msra.mxu1 %v411_v14  ;;  %v784_v14 = vld [vmem:[%s3532_s5 + $0x320] sm:$0xff]  ;;  %v453_v56 = vld [vmem:[%s3532_s5 + $0xf0] sm:$0xff] }
  0xb9   : > { %v424_v43 = vpop.permute.xlu1 %423  ;;  %v422_v46 = vpop.permute.xlu0 %421  ;;  %3562 = vst [vmem:[#allocation4_spill] sm:$0xff] %v2369_v23  ;;  %v778_v57 = vld [vmem:[%s3532_s5 + $0x310] sm:$0xff] }
  0xba   : > { %v429_v10 = vsel %vm425_vm6, %v424_v43, %v418_v47  ;;  %v427_v20 = vsel %vm425_vm6, %v420_v34, %v422_v46  ;;  %v426_v30 = vsel %vm425_vm6, %v422_v46, %v424_v43  ;;  %v451_v34 = vld [vmem:[%s3532_s5 + $0xe0] sm:$0xff]  ;;  %v454_v43 = vld [vmem:[%s3532_s5 + $0xf8] sm:$0xff] }
  0xbb   : > { %v434_v11 = vmul.f32 %v430_v9, %v429_v10  ;;  %v2393_v46 = vmul.f32 %v779_v18, %v429_v10  ;;  %v785_v9 = vld [vmem:[%s3532_s5 + $0x328] sm:$0xff]  ;;  %v437_v18 = vmul.f32 %v433_v24, %v426_v30 }
  0xbd   : > { %v441_v15 = vpop.permute.xlu1 %440  ;;  %v439_v16 = vpop.permute.xlu0 %438 }
  0xbe   : > { %v449_v22 = vsel %vm446_vm7, %v439_v16, %v441_v15 }
  0xbf   : > { %v456_v37 = vmul.f32 %v452_v7, %v449_v22  ;;  %v2379_v47 = vmul.f32 %v784_v14, %v449_v22  ;;  %v436_v7 = vmul.f32 %v432_v19, %v427_v20  ;;  %v786_v22 = vld [vmem:[%s3532_s5 + $0x330] sm:$0xff] }
  0xc1   : > { %v445_v14 = vpop.permute.xlu1 %444  ;;  %v443_v39 = vpop.permute.xlu0 %442  ;;  %v460_v33 = vpack.c.bf16 %v456_v37, %v435_v17  ;;  %v2414_v17 = vmul.f32 %v777_v25, %v427_v20  ;;  %v2416_v37 = vmul.f32 %v778_v57, %v426_v30  ;;  %v480_v20 = vld [vmem:[%s3532_s5 + $0x100] sm:$0xff] }
  0xc2   : > { %v450_v52 = vsel %vm446_vm7, %v445_v14, %v439_v16  ;;  %v447_v19 = vsel %vm446_vm7, %v443_v39, %v445_v14  ;;  %v448_v45 = vsel %vm446_vm7, %v441_v15, %v443_v39  ;;  %v501_v57 = vld [vmem:[%s3532_s5 + $0x120] sm:$0xff] }
  0xc3   : > { %v455_v12 = vmul.f32 %v451_v34, %v450_v52  ;;  %v2412_v13 = vmul.f32 %v787_v54, %v450_v52  ;;  %v457_v63 = vmul.f32 %v453_v56, %v448_v45  ;;  %v458_v44 = vmul.f32 %v454_v43, %v447_v19  ;;  %900 = vmatprep.subr.bf16.mxu0 %v460_v33  ;;  %v483_v54 = vld [vmem:[%s3532_s5 + $0x118] sm:$0xff] }
  0xc4   : > { %3563 = vst [vmem:[#allocation5_spill] sm:$0xff] %v2416_v37  ;;  %v2418_v24 = vmul.f32 %v785_v9, %v448_v45  ;;  %v2420_v10 = vmul.f32 %v786_v22, %v447_v19  ;;  %v504_v9 = vld [vmem:[%s3532_s5 + $0x138] sm:$0xff] }
  0xc5   : > { %v470_v16 = vpop.permute.xlu1 %469  ;;  %v468_v60 = vpop.permute.xlu0 %467  ;;  %v459_v14 = vpack.c.bf16 %v455_v12, %v434_v11  ;;  %v462_v59 = vpack.c.bf16 %v458_v44, %v437_v18  ;;  %v461_v6 = vpack.c.bf16 %v457_v63, %v436_v7  ;;  %v481_v44 = vld [vmem:[%s3532_s5 + $0x108] sm:$0xff]  ;;  %v482_v11 = vld [vmem:[%s3532_s5 + $0x110] sm:$0xff] }
  0xc6   : > { %3564 = vst [vmem:[#allocation6_spill] sm:$0xff] %v2420_v10  ;;  %v2435_v63 = vsel %vm475_vm8, %v468_v60, %v470_v16  ;;  %v502_v12 = vld [vmem:[%s3532_s5 + $0x128] sm:$0xff]  ;;  %v503_v7 = vld [vmem:[%s3532_s5 + $0x130] sm:$0xff] }
  0xc7   : > { %901 = vmatpush1.bf16.msra.mxu0 %v459_v14  ;;  %941 = vmatprep.subr.bf16.mxu1 %v462_v59  ;;  %v485_v34 = vmul.f32 %v481_v44, %v2435_v63 }
  0xc8   : > { %942 = vmatpush1.bf16.msra.mxu1 %v461_v6 }
  0xc9   : > { %v474_v45 = vpop.permute.xlu1 %473  ;;  %v472_v15 = vpop.permute.xlu0 %471 }
  0xca   : > { %v2445_v25 = vsel %vm475_vm8, %v474_v45, %v468_v60  ;;  %v2458_v56 = vsel %vm475_vm8, %v470_v16, %v472_v15  ;;  %v2462_v60 = vsel %vm475_vm8, %v472_v15, %v474_v45 }
  0xcb   : > { %v484_v22 = vmul.f32 %v480_v20, %v2445_v25  ;;  %v486_v14 = vmul.f32 %v482_v11, %v2458_v56 }
  0xcd   : > { %v491_v59 = vpop.permute.xlu1 %490  ;;  %v489_v6 = vpop.permute.xlu0 %488 }
  0xce   : > { %v499_v30 = vsel %vm496_vm9, %v489_v6, %v491_v59 }
  0xcf   : > { %v506_v43 = vmul.f32 %v502_v12, %v499_v30  ;;  %v487_v12 = vmul.f32 %v483_v54, %v2462_v60 }
  0xd1   : > { %v495_v18 = vpop.permute.xlu1 %494  ;;  %v493_v19 = vpop.permute.xlu0 %492  ;;  %v510_v16 = vpack.c.bf16 %v506_v43, %v485_v34 }
  0xd2   : > { %v500_v45 = vsel %vm496_vm9, %v495_v18, %v489_v6  ;;  %v497_v15 = vsel %vm496_vm9, %v493_v19, %v495_v18  ;;  %v498_v44 = vsel %vm496_vm9, %v491_v59, %v493_v19  ;;  %v531_v59 = vld [vmem:[%s3532_s5 + $0x148] sm:$0xff] }
  0xd3   : > { %v505_v30 = vmul.f32 %v501_v57, %v500_v45  ;;  %v507_v33 = vmul.f32 %v503_v7, %v498_v44  ;;  %v508_v52 = vmul.f32 %v504_v9, %v497_v15  ;;  %902 = vmatprep.subr.bf16.mxu0 %v510_v16  ;;  %v530_v7 = vld [vmem:[%s3532_s5 + $0x140] sm:$0xff]  ;;  %v532_v16 = vld [vmem:[%s3532_s5 + $0x150] sm:$0xff] }
  0xd5   : > { %v520_v20 = vpop.permute.xlu1 %519  ;;  %v518_v39 = vpop.permute.xlu0 %517  ;;  %v509_v34 = vpack.c.bf16 %v505_v30, %v484_v22  ;;  %v512_v43 = vpack.c.bf16 %v508_v52, %v487_v12  ;;  %v511_v11 = vpack.c.bf16 %v507_v33, %v486_v14  ;;  %v552_v52 = vld [vmem:[%s3532_s5 + $0x168] sm:$0xff]  ;;  %v533_v14 = vld [vmem:[%s3532_s5 + $0x158] sm:$0xff]  ;;  %v553_v12 = vld [vmem:[%s3532_s5 + $0x170] sm:$0xff] }
  0xd6   : > { %v528_v54 = vsel %vm525_vm10, %v518_v39, %v520_v20  ;;  %v554_v30 = vld [vmem:[%s3532_s5 + $0x178] sm:$0xff] }
  0xd7   : > { %903 = vmatpush1.bf16.msra.mxu0 %v509_v34  ;;  %943 = vmatprep.subr.bf16.mxu1 %v512_v43  ;;  %v535_v19 = vmul.f32 %v531_v59, %v528_v54 }
  0xd8   : > { %944 = vmatpush1.bf16.msra.mxu1 %v511_v11 }
  0xd9   : > { %v524_v6 = vpop.permute.xlu1 %523  ;;  %v522_v18 = vpop.permute.xlu0 %521 }
  0xda   : > { %v529_v9 = vsel %vm525_vm10, %v524_v6, %v518_v39  ;;  %v527_v45 = vsel %vm525_vm10, %v520_v20, %v522_v18  ;;  %v526_v44 = vsel %vm525_vm10, %v522_v18, %v524_v6  ;;  %v551_v39 = vld [vmem:[%s3532_s5 + $0x160] sm:$0xff] }
  0xdb   : > { %v534_v34 = vmul.f32 %v530_v7, %v529_v9  ;;  %v536_v59 = vmul.f32 %v532_v16, %v527_v45  ;;  %v537_v7 = vmul.f32 %v533_v14, %v526_v44  ;;  %v581_v16 = vld [vmem:[%s3532_s5 + $0x188] sm:$0xff]  ;;  %v588_v14 = vld [vmem:[%s3532_s5 + $0x1a0] sm:$0xff]  ;;  %v591_v44 = vld [vmem:[%s3532_s5 + $0x1b8] sm:$0xff] }
  0xdd   : > { %v541_v33 = vpop.permute.xlu1 %540  ;;  %v539_v57 = vpop.permute.xlu0 %538 }
  0xde   : > { %v549_v22 = vsel %vm546_vm11, %v539_v57, %v541_v33 }
  0xdf   : > { %v556_v15 = vmul.f32 %v552_v52, %v549_v22  ;;  %v589_v52 = vld [vmem:[%s3532_s5 + $0x1a8] sm:$0xff] }
  0xe1   : > { %v545_v43 = vpop.permute.xlu1 %544  ;;  %v543_v11 = vpop.permute.xlu0 %542  ;;  %v560_v20 = vpack.c.bf16 %v556_v15, %v535_v19 }
  0xe2   : > { %v550_v6 = vsel %vm546_vm11, %v545_v43, %v539_v57  ;;  %v547_v18 = vsel %vm546_vm11, %v543_v11, %v545_v43  ;;  %v548_v54 = vsel %vm546_vm11, %v541_v33, %v543_v11  ;;  %v593_v33 = vmul.f32 %v589_v52, %v1922_v3  ;;  %v580_v3 = vld [vmem:[%s3532_s5 + $0x180] sm:$0xff] }
  0xe3   : > { %v555_v9 = vmul.f32 %v551_v39, %v550_v6  ;;  %v557_v22 = vmul.f32 %v553_v12, %v548_v54  ;;  %v558_v19 = vmul.f32 %v554_v30, %v547_v18  ;;  %904 = vmatprep.subr.bf16.mxu0 %v560_v20  ;;  %v590_v39 = vld [vmem:[%s3532_s5 + $0x1b0] sm:$0xff]  ;;  %v592_v18 = vmul.f32 %v588_v14, %v1912_v1  ;;  %v620_v14 = vld [vmem:[%s3532_s5 + $0x1d8] sm:$0xff] }
  0xe4   : > { %v582_v30 = vld [vmem:[%s3532_s5 + $0x190] sm:$0xff]  ;;  %v595_v54 = vmul.f32 %v591_v44, %v1919_v2 }
  0xe5   : > { %v570_v57 = vpop.permute.xlu1 %569  ;;  %v568_v45 = vpop.permute.xlu0 %567  ;;  %v559_v15 = vpack.c.bf16 %v555_v9, %v534_v34  ;;  %v562_v43 = vpack.c.bf16 %v558_v19, %v537_v7  ;;  %v561_v37 = vpack.c.bf16 %v557_v22, %v536_v59  ;;  %v583_v34 = vld [vmem:[%s3532_s5 + $0x198] sm:$0xff] }
  0xe6   : > { %v578_v11 = vsel %vm575_vm12, %v568_v45, %v570_v57 }
  0xe7   : > { %v585_v12 = vmul.f32 %v581_v16, %v578_v11  ;;  %905 = vmatpush1.bf16.msra.mxu0 %v559_v15  ;;  %945 = vmatprep.subr.bf16.mxu1 %v562_v43 }
  0xe8   : > { %946 = vmatpush1.bf16.msra.mxu1 %v561_v37  ;;  %v594_v37 = vmul.f32 %v590_v39, %v1909_v0  ;;  %v618_v39 = vld [vmem:[%s3532_s5 + $0x1c8] sm:$0xff] }
  0xe9   : > { %v574_v20 = vpop.permute.xlu1 %573  ;;  %v572_v59 = vpop.permute.xlu0 %571  ;;  %v597_v6 = vpack.c.bf16 %v593_v33, %v585_v12 }
  0xea   : > { %v579_v52 = vsel %vm575_vm12, %v574_v20, %v568_v45  ;;  %v576_v7 = vsel %vm575_vm12, %v572_v59, %v574_v20  ;;  %v577_v9 = vsel %vm575_vm12, %v570_v57, %v572_v59  ;;  %v641_v59 = vld [vmem:[%s3532_s5 + $0x1f8] sm:$0xff] }
  0xeb   : > { %v584_v22 = vmul.f32 %v580_v3, %v579_v52  ;;  %v586_v19 = vmul.f32 %v582_v30, %v577_v9  ;;  %v587_v16 = vmul.f32 %v583_v34, %v576_v7  ;;  %906 = vmatprep.subr.bf16.mxu0 %v597_v6  ;;  %v619_v3 = vld [vmem:[%s3532_s5 + $0x1d0] sm:$0xff]  ;;  %v638_v30 = vld [vmem:[%s3532_s5 + $0x1e0] sm:$0xff]  ;;  %v639_v6 = vld [vmem:[%s3532_s5 + $0x1e8] sm:$0xff] }
  0xed   : > { %v607_v15 = vpop.permute.xlu1 %606  ;;  %v605_v43 = vpop.permute.xlu0 %604  ;;  %v596_v1 = vpack.c.bf16 %v592_v18, %v584_v22  ;;  %v599_v33 = vpack.c.bf16 %v595_v54, %v587_v16  ;;  %v598_v2 = vpack.c.bf16 %v594_v37, %v586_v19  ;;  %v640_v18 = vld [vmem:[%s3532_s5 + $0x1f0] sm:$0xff]  ;;  %v617_v54 = vld [vmem:[%s3532_s5 + $0x1c0] sm:$0xff] }
  0xee   : > { %v615_v37 = vsel %vm612_vm14, %v605_v43, %v607_v15 }
  0xef   : > { %907 = vmatpush1.bf16.msra.mxu0 %v596_v1  ;;  %947 = vmatprep.subr.bf16.mxu1 %v599_v33  ;;  %v621_v23 = vmul.f32 %v617_v54, %v615_v37  ;;  %v691_v37 = vld [vmem:[%s3532_s5 + $0x238] sm:$0xff] }
  0xf0   : > { %948 = vmatpush1.bf16.msra.mxu1 %v598_v2 }
  0xf1   : > { %v611_v0 = vpop.permute.xlu1 %610  ;;  %v609_v45 = vpop.permute.xlu0 %608 }
  0xf2   : > { %v616_v44 = vsel %vm612_vm14, %v611_v0, %v605_v43  ;;  %v614_v12 = vsel %vm612_vm14, %v607_v15, %v609_v45  ;;  %v613_v20 = vsel %vm612_vm14, %v609_v45, %v611_v0 }
  0xf3   : > { %v624_v52 = vmul.f32 %v620_v14, %v616_v44  ;;  %v622_v7 = vmul.f32 %v618_v39, %v614_v12  ;;  %v623_v2 = vmul.f32 %v619_v3, %v613_v20 }
  0xf5   : > { %v628_v11 = vpop.permute.xlu1 %627  ;;  %v626_v57 = vpop.permute.xlu0 %625 }
  0xf6   : > { %v636_v34 = vsel %vm3551_vm13, %v626_v57, %v628_v11 }
  0xf7   : > { %v642_v19 = vmul.f32 %v638_v30, %v636_v34  ;;  %v670_v34 = vld [vmem:[%s3532_s5 + $0x218] sm:$0xff] }
  0xf9   : > { %v632_v9 = vpop.permute.xlu1 %631  ;;  %v630_v22 = vpop.permute.xlu0 %629  ;;  %v646_v12 = vpack.c.bf16 %v642_v19, %v621_v23  ;;  %v668_v23 = vld [vmem:[%s3532_s5 + $0x208] sm:$0xff] }
  0xfa   : > { %v637_v16 = vsel %vm3551_vm13, %v632_v9, %v626_v57  ;;  %v634_v1 = vsel %vm3551_vm13, %v630_v22, %v632_v9  ;;  %v635_v33 = vsel %vm3551_vm13, %v628_v11, %v630_v22  ;;  %vm662_vm13 = vcmp.lt.s32.totalorder %v2036_v5, 120  ;;  %v667_v9 = vld [vmem:[%s3532_s5 + $0x200] sm:$0xff] }
  0xfb   : > { %v645_v0 = vmul.f32 %v641_v59, %v637_v16  ;;  %v643_v45 = vmul.f32 %v639_v6, %v635_v33  ;;  %v644_v10 = vmul.f32 %v640_v18, %v634_v1  ;;  %v669_v59 = vld [vmem:[%s3532_s5 + $0x210] sm:$0xff]  ;;  %v688_v6 = vld [vmem:[%s3532_s5 + $0x220] sm:$0xff] }
  0xfd   : > { %v657_v15 = vpop.permute.xlu1 %656  ;;  %v655_v43 = vpop.permute.xlu0 %654  ;;  %v647_v14 = vpack.c.bf16 %v643_v45, %v622_v7  ;;  %v649_v44 = vpack.c.bf16 %v645_v0, %v624_v52  ;;  %v648_v39 = vpack.c.bf16 %v644_v10, %v623_v2  ;;  %v689_v52 = vld [vmem:[%s3532_s5 + $0x228] sm:$0xff]  ;;  %v690_v7 = vld [vmem:[%s3532_s5 + $0x230] sm:$0xff] }
  0xfe   : > { %v665_v22 = vsel %vm662_vm13, %v655_v43, %v657_v15 }
  0xff   : > { %908 = vmatprep.subr.bf16.mxu0 %v647_v14  ;;  %949 = vmatprep.subr.bf16.mxu1 %v649_v44 }
 0x100   : > { %909 = vmatpush1.bf16.msra.mxu0 %v646_v12  ;;  %950 = vmatpush1.bf16.msra.mxu1 %v648_v39 }
 0x101   : > { %v661_v57 = vpop.permute.xlu1 %660  ;;  %v659_v30 = vpop.permute.xlu0 %658 }
 0x102   : > { %v666_v10 = vsel %vm662_vm13, %v661_v57, %v655_v43  ;;  %v664_v20 = vsel %vm662_vm13, %v657_v15, %v659_v30  ;;  %v663_v54 = vsel %vm662_vm13, %v659_v30, %v661_v57  ;;  %v671_v30 = vmul.f32 %v667_v9, %v665_v22 }
 0x103   : > { %v674_v19 = vmul.f32 %v670_v34, %v666_v10  ;;  %v672_v16 = vmul.f32 %v668_v23, %v664_v20  ;;  %v673_v44 = vmul.f32 %v669_v59, %v663_v54  ;;  %v3567_v23 = vpack.c.bf16 %v2088_v28, %v2086_v27  ;;  %v801_v27 = vld [vmem:[%s3532_s5 + $0x348] sm:$0xff] }
 0x104   : > { %v3568_v20 = vpack.c.bf16 %v2136_v53, %v2126_v48  ;;  %v3569_v59 = vpack.c.bf16 %v2228_v62, %v2224_v58  ;;  %v3571_v28 = vpack.c.bf16 %v2189_v26, %v2179_v21  ;;  %v3572_v48 = vpack.c.bf16 %v2230_v4, %v2226_v61  ;;  %v800_v53 = vld [vmem:[%s3532_s5 + $0x340] sm:$0xff]  ;;  %v802_v21 = vld [vmem:[%s3532_s5 + $0x350] sm:$0xff] }
 0x105   : > { %v678_v11 = vpop.permute.xlu1 %677  ;;  %v676_v3 = vpop.permute.xlu0 %675  ;;  %v805_v26 = vmul.f32 %v801_v27, %v2458_v56  ;;  %v3576_v58 = vpack.c.bf16 %v2330_v42, %v2326_v38  ;;  %v3577_v61 = vpack.c.bf16 %v2418_v24, %v2414_v17  ;;  %v3578_v62 = vpack.c.bf16 %v2412_v13, %v2393_v46  ;;  %v3582_v42 = vld [vmem:[#allocation5_spill] sm:$0xff]  ;;  %v3584_v24 = vld [vmem:[#allocation3_spill] sm:$0xff] }
 0x106   : > { %v686_v18 = vsel %vm683_vm15, %v676_v3, %v678_v11  ;;  %v804_v4 = vmul.f32 %v800_v53, %v2435_v63  ;;  %v1780_v63 = vcombine.low %v3584_v24, %v3584_v24 }
 0x107   : > { %v692_v2 = vmul.f32 %v688_v6, %v686_v18 }
 0x109   : > { %v682_v1 = vpop.permute.xlu1 %681  ;;  %v680_v33 = vpop.permute.xlu0 %679  ;;  %v696_v10 = vpack.c.bf16 %v692_v2, %v671_v30 }
 0x10a   : > { %v687_v0 = vsel %vm683_vm15, %v682_v1, %v676_v3  ;;  %v684_v45 = vsel %vm683_vm15, %v680_v33, %v682_v1  ;;  %v685_v14 = vsel %vm683_vm15, %v678_v11, %v680_v33  ;;  %v3565_v3 = vpack.c.bf16 %v2130_v50, %v2098_v32 }
 0x10b   : > { %v695_v39 = vmul.f32 %v691_v37, %v687_v0  ;;  %v693_v12 = vmul.f32 %v689_v52, %v685_v14  ;;  %v694_v57 = vmul.f32 %v690_v7, %v684_v45  ;;  %v3566_v11 = vpack.c.bf16 %v2128_v49, %v2096_v31  ;;  %v803_v31 = vld [vmem:[%s3532_s5 + $0x358] sm:$0xff] }
 0x10c   : > { %v3570_v32 = vpack.c.bf16 %v2222_v55, %v2203_v36  ;;  %v3573_v49 = vpack.c.bf16 %v2328_v40, %v2324_v35  ;;  %v3574_v50 = vpack.c.bf16 %v2322_v29, %v2303_v8  ;;  %v807_v36 = vmul.f32 %v803_v31, %v2445_v25  ;;  %v3579_v35 = vld [vmem:[#allocation4_spill] sm:$0xff]  ;;  %v3581_v40 = vld [vmem:[#allocation6_spill] sm:$0xff] }
 0x10d   : > { %v697_v15 = vpack.c.bf16 %v693_v12, %v672_v16  ;;  %v699_v43 = vpack.c.bf16 %v695_v39, %v674_v19  ;;  %v698_v34 = vpack.c.bf16 %v694_v57, %v673_v44  ;;  %v3575_v55 = vpack.c.bf16 %v2289_v51, %v2279_v41 }
 0x10e   : > { %v806_v8 = vmul.f32 %v802_v21, %v2462_v60  ;;  %v3552_v29 = vmov 0.0   ;;  %v3580_v38 = vpack.c.bf16 %v2379_v47, %v3579_v35  ;;  %v3583_v17 = vpack.c.bf16 %v3581_v40, %v3582_v42  ;;  %v1025_v40 = vld [vmem:[%s3532_s5 + $0x8] sm:$0xff]  ;;  %v1432_v42 = vld [vmem:[%s3532_s5 + $0x240] sm:$0xff] }
 0x10f   : > { %910 = vmatprep.subr.bf16.mxu0 %v697_v15  ;;  %951 = vmatprep.subr.bf16.mxu1 %v699_v43  ;;  %v809_v41 = vpack.c.bf16 %v3552_v29, %v805_v26  ;;  %v811_v51 = vpack.c.bf16 %v3552_v29, %v807_v36  ;;  %v808_v13 = vpack.c.bf16 %v3552_v29, %v804_v4 }
 0x110   : > { %911 = vmatpush1.bf16.msra.mxu0 %v696_v10  ;;  %952 = vmatpush1.bf16.msra.mxu1 %v698_v34  ;;  %v810_v46 = vpack.c.bf16 %v3552_v29, %v806_v8 }
 0x111   : > { %912 = vmatprep.subr.bf16.mxu0 %v3565_v3  ;;  %953 = vmatprep.subr.bf16.mxu1 %v3566_v11 }
 0x114   : > { %913 = vmatpush1.bf16.msra.mxu0 %v3567_v23  ;;  %954 = vmatpush1.bf16.msra.mxu1 %v3568_v20 }
 0x115   : > { %914 = vmatprep.subr.bf16.mxu0 %v3569_v59  ;;  %955 = vmatprep.subr.bf16.mxu1 %v3570_v32 }
 0x118   : > { %915 = vmatpush1.bf16.msra.mxu0 %v3571_v28  ;;  %956 = vmatpush1.bf16.msra.mxu1 %v3572_v48 }
 0x119   : > { %916 = vmatprep.subr.bf16.mxu0 %v3573_v49  ;;  %957 = vmatprep.subr.bf16.mxu1 %v3574_v50 }
 0x11c   : > { %917 = vmatpush1.bf16.msra.mxu0 %v3575_v55  ;;  %958 = vmatpush1.bf16.msra.mxu1 %v3576_v58 }
 0x11d   : > { %918 = vmatprep.subr.bf16.mxu0 %v3577_v61  ;;  %959 = vmatprep.subr.bf16.mxu1 %v3578_v62 }
 0x120   : > { %919 = vmatpush1.bf16.msra.mxu0 %v3580_v38  ;;  %960 = vmatpush1.bf16.msra.mxu1 %v3583_v17  ;;  %v1433_v17 = vld [vmem:[%s3532_s5 + $0x248] sm:$0xff] }
 0x121   : > { %920 = vmatprep.subr.bf16.mxu0 %v809_v41  ;;  %961 = vmatprep.subr.bf16.mxu1 %v811_v51  ;;  %v885_v25 = vpop.permute.xlu0 %884 }
 0x124   : > { %921 = vmatpush1.bf16.msra.mxu0 %v808_v13  ;;  %962 = vmatpush1.bf16.msra.mxu1 %v810_v46 }
 0x127   : > { %927 = vmatmul.mubr.bf16.vlgmr.msra.gmra.mrb[0].mxu0 %v1780_v63  ;;  %968 = vmatmul.mubr.bf16.vlgmr.msra.gmra.mrb[0].mxu1 %v1780_v63  ;;  %v1045_v63 = vld [vmem:[%s3532_s5 + $0x28] sm:$0xff] }
 0x1fa   : > { %v969_v47 = vpop.f32.mrb[0].mxu1  ;;  %v928_v56 = vpop.f32.mrb[0].mxu0 }
 0x1fb   : > { %v970_v60 = vadd.f32 %v969_v47, %v885_v25  ;;  %v929_v6 = vadd.f32 %v928_v56, %v885_v25  ;;  %v930_v18 = vpop.f32.mrb[1].mxu0  ;;  %v971_v54 = vpop.f32.mrb[1].mxu1  ;;  %v1441_v47 = vld [vmem:[%s3532_s5 + $0x268] sm:$0xff]  ;;  %v1024_v56 = vld [vmem:[%s3532_s5] sm:$0xff] }
 0x1fc   : > { %v931_v37 = vadd.f32 %v930_v18, %v885_v25  ;;  %v972_v52 = vadd.f32 %v971_v54, %v885_v25  ;;  %v932_v7 = vpop.f32.mrb[2].mxu0  ;;  %v973_v9 = vpop.f32.mrb[2].mxu1  ;;  %v1440_v25 = vld [vmem:[%s3532_s5 + $0x260] sm:$0xff] }
 0x1fd   : > { %v982_v22 = vmul.f32 0.044715, %v970_v60  ;;  %v980_v19 = vmul.f32 0.044715, %v929_v6  ;;  %v933_v0 = vpop.f32.mrb[3].mxu0  ;;  %v974_v45 = vpop.f32.mrb[3].mxu1 }
 0x1fe   : > { %v981_v16 = vmul.f32 0.044715, %v931_v37  ;;  %v983_v1 = vmul.f32 0.044715, %v972_v52  ;;  %v978_v31 = vmul.f32 0.5, %v970_v60  ;;  %v976_v48 = vmul.f32 0.5, %v929_v6 }
 0x1ff   : > { %v986_v33 = vmul.f32 %v982_v22, %v970_v60  ;;  %v984_v2 = vmul.f32 %v980_v19, %v929_v6  ;;  %v977_v26 = vmul.f32 0.5, %v931_v37  ;;  %v979_v61 = vmul.f32 0.5, %v972_v52  ;;  %v1434_v7 = vld [vmem:[%s3532_s5 + $0x250] sm:$0xff]  ;;  %v1435_v9 = vld [vmem:[%s3532_s5 + $0x258] sm:$0xff]  ;;  %v1044_v45 = vld [vmem:[%s3532_s5 + $0x20] sm:$0xff] }
 0x200   : > { %v985_v14 = vmul.f32 %v981_v16, %v931_v37  ;;  %v987_v44 = vmul.f32 %v983_v1, %v972_v52  ;;  %v1046_v1 = vld [vmem:[%s3532_s5 + $0x30] sm:$0xff] }
 0x201   : > { %v990_v39 = vmul.f32 %v986_v33, %v970_v60  ;;  %v988_v12 = vmul.f32 %v984_v2, %v929_v6 }
 0x202   : > { %v989_v57 = vmul.f32 %v985_v14, %v931_v37  ;;  %v991_v30 = vmul.f32 %v987_v44, %v972_v52  ;;  %v1609_v14 = vld [vmem:[%s3531_s4] sm:$0xff] }
 0x203   : > { %v994_v15 = vadd.f32 %v990_v39, %v970_v60  ;;  %v992_v43 = vadd.f32 %v988_v12, %v929_v6  ;;  %v1027_v60 = vld [vmem:[%s3532_s5 + $0x18] sm:$0xff] }
 0x204   : > { %v993_v34 = vadd.f32 %v989_v57, %v931_v37  ;;  %v995_v10 = vadd.f32 %v991_v30, %v972_v52  ;;  %v1047_v57 = vld [vmem:[%s3532_s5 + $0x38] sm:$0xff]  ;;  %v1442_v30 = vld [vmem:[%s3532_s5 + $0x270] sm:$0xff] }
 0x205   : > { %v998_v3 = vmul.f32 0.7978846, %v994_v15  ;;  %v996_v11 = vmul.f32 0.7978846, %v992_v43  ;;  %v1443_v15 = vld [vmem:[%s3532_s5 + $0x278] sm:$0xff]  ;;  %v1026_v43 = vld [vmem:[%s3532_s5 + $0x10] sm:$0xff] }
 0x206   : > { %v997_v23 = vmul.f32 0.7978846, %v993_v34  ;;  %v999_v20 = vmul.f32 0.7978846, %v995_v10 }
 0x207   : > { %1820 = vtanh.f32 %v998_v3 }
 0x208   : > { %1822 = vtanh.f32 %v996_v11 }
 0x209   : > { %1824 = vtanh.f32 %v997_v23 }
 0x20a   : > { %1826 = vtanh.f32 %v999_v20 }
 0x211   : > { %v1821_v59 = vpop.eup %1820 }
 0x212   : > { %v1823_v32 = vpop.eup %1822  ;;  %v1006_v27 = vadd.f32 1.0, %v1821_v59 }
 0x213   : > { %v1825_v28 = vpop.eup %1824  ;;  %v1004_v49 = vadd.f32 1.0, %v1823_v32 }
 0x214   : > { %v2715_v50 = vmul.f32 %v1006_v27, %v978_v31  ;;  %v1005_v36 = vadd.f32 1.0, %v1825_v28  ;;  %v1827_v21 = vpop.eup %1826 }
 0x215   : > { %v2717_v53 = vmul.f32 %v1004_v49, %v976_v48  ;;  %v1007_v58 = vadd.f32 1.0, %v1827_v21 }
 0x216   : > { %1016 = vrot.lane.b32.xlu0 %v2715_v50, %s1836_s27  ;;  %v2723_v55 = vmul.f32 %v1005_v36, %v977_v26 }
 0x217   : > { %1012 = vrot.lane.b32.xlu1 %v2717_v53, %s1836_s27  ;;  %v2729_v62 = vmul.f32 %v1007_v58, %v979_v61 }
 0x21a   : > { %1032 = vrot.lane.b32.xlu0 %v2717_v53, %s1837_s28 }
 0x21b   : > { %1014 = vrot.lane.b32.xlu1 %v2723_v55, %s1836_s27 }
 0x21e   : > { %1036 = vrot.lane.b32.xlu0 %v2715_v50, %s1837_s28 }
 0x21f   : > { %1018 = vrot.lane.b32.xlu1 %v2729_v62, %s1836_s27  ;;  %s3585_s27 = smov 8  }
 0x222   : > { %1060 = vrot.lane.b32.xlu0 %v2717_v53, %s1838_s29 }
 0x223   : > { %1034 = vrot.lane.b32.xlu1 %v2723_v55, %s1837_s28 }
 0x226   : > { %1064 = vrot.lane.b32.xlu0 %v2715_v50, %s1838_s29 }
 0x227   : > { %1038 = vrot.lane.b32.xlu1 %v2729_v62, %s1837_s28  ;;  %s3586_s28 = smov 7  }
 0x22a   : > { %1080 = vrot.lane.b32.xlu0 %v2717_v53, %s1839_s30 }
 0x22b   : > { %1062 = vrot.lane.b32.xlu1 %v2723_v55, %s1838_s29 }
 0x22e   : > { %1084 = vrot.lane.b32.xlu0 %v2715_v50, %s1839_s30 }
 0x22f   : > { %1066 = vrot.lane.b32.xlu1 %v2729_v62, %s1838_s29  ;;  %s3587_s29 = smov 1  }
 0x232   : > { %1108 = vrot.lane.b32.xlu0 %v2717_v53, %s1840_s7 }
 0x233   : > { %1082 = vrot.lane.b32.xlu1 %v2723_v55, %s1839_s30 }
 0x236   : > { %1112 = vrot.lane.b32.xlu0 %v2715_v50, %s1840_s7 }
 0x237   : > { %1086 = vrot.lane.b32.xlu1 %v2729_v62, %s1839_s30  ;;  %s3588_s30 = smov 127  }
 0x23a   : > { %1128 = vrot.lane.b32.xlu0 %v2717_v53, %s1841_s8 }
 0x23b   : > { %1110 = vrot.lane.b32.xlu1 %v2723_v55, %s1840_s7 }
 0x23e   : > { %1132 = vrot.lane.b32.xlu0 %v2715_v50, %s1841_s8 }
 0x23f   : > { %1114 = vrot.lane.b32.xlu1 %v2729_v62, %s1840_s7  ;;  %s3589_s7 = smov 121  }
 0x242   : > { %1156 = vrot.lane.b32.xlu0 %v2717_v53, %s1842_s9 }
 0x243   : > { %1130 = vrot.lane.b32.xlu1 %v2723_v55, %s1841_s8 }
 0x246   : > { %1160 = vrot.lane.b32.xlu0 %v2715_v50, %s1842_s9 }
 0x247   : > { %1134 = vrot.lane.b32.xlu1 %v2729_v62, %s1841_s8  ;;  %s3590_s8 = smov 119  }
 0x24a   : > { %1176 = vrot.lane.b32.xlu0 %v2717_v53, %s1843_s10 }
 0x24b   : > { %1158 = vrot.lane.b32.xlu1 %v2723_v55, %s1842_s9 }
 0x24e   : > { %1180 = vrot.lane.b32.xlu0 %v2715_v50, %s1843_s10 }
 0x24f   : > { %1162 = vrot.lane.b32.xlu1 %v2729_v62, %s1842_s9 }
 0x252   : > { %1204 = vrot.lane.b32.xlu0 %v2717_v53, %s1844_s11 }
 0x253   : > { %1178 = vrot.lane.b32.xlu1 %v2723_v55, %s1843_s10 }
 0x256   : > { %1208 = vrot.lane.b32.xlu0 %v2715_v50, %s1844_s11 }
 0x257   : > { %1182 = vrot.lane.b32.xlu1 %v2729_v62, %s1843_s10 }
 0x25a   : > { %1224 = vrot.lane.b32.xlu0 %v2717_v53, %s1845_s12 }
 0x25b   : > { %1206 = vrot.lane.b32.xlu1 %v2723_v55, %s1844_s11 }
 0x25e   : > { %1228 = vrot.lane.b32.xlu0 %v2715_v50, %s1845_s12 }
 0x25f   : > { %1210 = vrot.lane.b32.xlu1 %v2729_v62, %s1844_s11 }
 0x262   : > { %1252 = vrot.lane.b32.xlu0 %v2717_v53, %s3585_s27 }
 0x263   : > { %1226 = vrot.lane.b32.xlu1 %v2723_v55, %s1845_s12 }
 0x266   : > { %1256 = vrot.lane.b32.xlu0 %v2715_v50, %s3585_s27 }
 0x267   : > { %1230 = vrot.lane.b32.xlu1 %v2729_v62, %s1845_s12 }
 0x26a   : > { %1272 = vrot.lane.b32.xlu0 %v2717_v53, %s3586_s28 }
 0x26b   : > { %1254 = vrot.lane.b32.xlu1 %v2723_v55, %s3585_s27 }
 0x26e   : > { %1276 = vrot.lane.b32.xlu0 %v2715_v50, %s3586_s28 }
 0x26f   : > { %1258 = vrot.lane.b32.xlu1 %v2729_v62, %s3585_s27  ;;  %s251_s27 = scalar_lea.vmem %s3533_s6, %s3626_s25 }
 0x272   : > { %1300 = vrot.lane.b32.xlu0 %v2717_v53, %s3587_s29 }
 0x273   : > { %1274 = vrot.lane.b32.xlu1 %v2723_v55, %s3586_s28 }
 0x276   : > { %1304 = vrot.lane.b32.xlu0 %v2715_v50, %s3587_s29 }
 0x277   : > { %1278 = vrot.lane.b32.xlu1 %v2729_v62, %s3586_s28 }
 0x27a   : > { %1336 = vrot.lane.b32.xlu0 %v2717_v53, %s3588_s30 }
 0x27b   : > { %1302 = vrot.lane.b32.xlu1 %v2723_v55, %s3587_s29 }
 0x27e   : > { %1340 = vrot.lane.b32.xlu0 %v2715_v50, %s3588_s30 }
 0x27f   : > { %1306 = vrot.lane.b32.xlu1 %v2729_v62, %s3587_s29 }
 0x282   : > { %1356 = vrot.lane.b32.xlu0 %v2717_v53, %s3589_s7 }
 0x283   : > { %1338 = vrot.lane.b32.xlu1 %v2723_v55, %s3588_s30 }
 0x286   : > { %1360 = vrot.lane.b32.xlu0 %v2715_v50, %s3589_s7 }
 0x287   : > { %1342 = vrot.lane.b32.xlu1 %v2729_v62, %s3588_s30 }
 0x288   : > { %v1017_v4 = vpop.permute.xlu0 %1016 }
 0x289   : > { %v1013_v8 = vpop.permute.xlu1 %1012 }
 0x28a   : > { %1384 = vrot.lane.b32.xlu0 %v2717_v53, %s1851_s18 }
 0x28b   : > { %1358 = vrot.lane.b32.xlu1 %v2723_v55, %s3589_s7 }
 0x28c   : > { %v1033_v41 = vpop.permute.xlu0 %1032 }
 0x28d   : > { %v1015_v51 = vpop.permute.xlu1 %1014 }
 0x28e   : > { %1388 = vrot.lane.b32.xlu0 %v2715_v50, %s1851_s18  ;;  %v1022_v13 = vsel %vm275_vm0, %v1013_v8, %v1015_v51  ;;  %v1021_v46 = vsel %vm275_vm0, %v1015_v51, %v1017_v4 }
 0x28f   : > { %1362 = vrot.lane.b32.xlu1 %v2729_v62, %s3589_s7  ;;  %v1029_v37 = vmul.f32 %v1025_v40, %v1022_v13  ;;  %v2885_v52 = vmul.f32 %v1432_v42, %v1022_v13  ;;  %v2899_v16 = vmul.f32 %v1433_v17, %v1021_v46  ;;  %v1030_v36 = vmul.f32 %v1026_v43, %v1021_v46  ;;  %v1456_v40 = vld [vmem:[%s3532_s5 + $0x280] sm:$0xff]  ;;  %v1457_v42 = vld [vmem:[%s3532_s5 + $0x288] sm:$0xff] }
 0x290   : > { %v1037_v35 = vpop.permute.xlu0 %1036 }
 0x291   : > { %v1019_v38 = vpop.permute.xlu1 %1018 }
 0x292   : > { %1404 = vrot.lane.b32.xlu0 %v2717_v53, %s3590_s8  ;;  %v1020_v6 = vsel %vm275_vm0, %v1017_v4, %v1019_v38  ;;  %v1023_v18 = vsel %vm275_vm0, %v1019_v38, %v1013_v8  ;;  %v1073_v38 = vld [vmem:[%s3532_s5 + $0x48] sm:$0xff]  ;;  %vm3598_vm0 = vcmp.lt.s32.totalorder %v2036_v5, 121 }
 0x293   : > { %1386 = vrot.lane.b32.xlu1 %v2723_v55, %s1851_s18  ;;  %v1028_v44 = vmul.f32 %v1024_v56, %v1023_v18  ;;  %v1031_v39 = vmul.f32 %v1027_v60, %v1020_v6  ;;  %v2928_v34 = vmul.f32 %v1434_v7, %v1020_v6  ;;  %v2934_v20 = vmul.f32 %v1435_v9, %v1023_v18  ;;  %v1072_v56 = vld [vmem:[%s3532_s5 + $0x40] sm:$0xff]  ;;  %v1075_v60 = vld [vmem:[%s3532_s5 + $0x58] sm:$0xff]  ;;  %v1458_v6 = vld [vmem:[%s3532_s5 + $0x290] sm:$0xff] }
 0x294   : > { %v2864_v24 = vpop.permute.xlu0 %1060 }
 0x295   : > { %v1035_v54 = vpop.permute.xlu1 %1034 }
 0x296   : > { %v1041_v22 = vsel %vm296_vm1, %v1035_v54, %v1037_v35  ;;  %v1042_v19 = vsel %vm296_vm1, %v1033_v41, %v1035_v54  ;;  %1408 = vrot.lane.b32.xlu0 %v2715_v50, %s3590_s8 }
 0x297   : > { %v1049_v33 = vmul.f32 %v1045_v63, %v1042_v19  ;;  %v2904_v2 = vmul.f32 %v1440_v25, %v1042_v19  ;;  %v2906_v0 = vmul.f32 %v1441_v47, %v1041_v22  ;;  %1390 = vrot.lane.b32.xlu1 %v2729_v62, %s1851_s18  ;;  %v1050_v59 = vmul.f32 %v1046_v1, %v1041_v22  ;;  %v1093_v63 = vld [vmem:[%s3532_s5 + $0x68] sm:$0xff]  ;;  %v1464_v25 = vld [vmem:[%s3532_s5 + $0x2a0] sm:$0xff]  ;;  %v1459_v22 = vld [vmem:[%s3532_s5 + $0x298] sm:$0xff] }
 0x298   : > { %v1065_v12 = vpop.permute.xlu0 %1064  ;;  %v1465_v47 = vld [vmem:[%s3532_s5 + $0x2a8] sm:$0xff] }
 0x299   : > { %v1039_v3 = vpop.permute.xlu1 %1038  ;;  %v1053_v11 = vpack.c.bf16 %v1049_v33, %v1029_v37 }
 0x29a   : > { %v1040_v32 = vsel %vm296_vm1, %v1037_v35, %v1039_v3  ;;  %v1043_v31 = vsel %vm296_vm1, %v1039_v3, %v1033_v41  ;;  %1612 = vperm.xlu0 %1815, %v1609_v14   ;;  %v1054_v41 = vpack.c.bf16 %v1050_v59, %v1030_v36  ;;  %v1466_v3 = vld [vmem:[%s3532_s5 + $0x2b0] sm:$0xff]  ;;  %v3026_v59 = vld [vmem:[%s3529_s2] sm:$0xff]  ;;  %vm3599_vm1 = vmmov %vm3598_vm0 }
 0x29b   : > { %v1048_v27 = vmul.f32 %v1044_v45, %v1043_v31  ;;  %v1051_v28 = vmul.f32 %v1047_v57, %v1040_v32  ;;  %v2940_v48 = vmul.f32 %v1442_v30, %v1040_v32  ;;  %v2942_v49 = vmul.f32 %v1443_v15, %v1043_v31  ;;  %1406 = vrot.lane.b32.xlu1 %v2723_v55, %s3590_s8  ;;  %v1074_v32 = vld [vmem:[%s3532_s5 + $0x50] sm:$0xff] }
 0x29c   : > { %1622 = vmatprep.subr.bf16.mxu0 %v1053_v11  ;;  %v1081_v21 = vpop.permute.xlu0 %1080  ;;  %v1467_v11 = vld [vmem:[%s3532_s5 + $0x2b8] sm:$0xff]  ;;  %3591 = vst [vmem:[#allocation4_spill] sm:$0xff] %v3026_v59 }
 0x29d   : > { %v1052_v26 = vpack.c.bf16 %v1048_v27, %v1028_v44  ;;  %v1063_v61 = vpop.permute.xlu1 %1062  ;;  %v1055_v4 = vpack.c.bf16 %v1051_v28, %v1031_v39  ;;  %v1092_v39 = vld [vmem:[%s3532_s5 + $0x60] sm:$0xff] }
 0x29e   : > { %v1070_v17 = vsel %vm325_vm2, %v2864_v24, %v1063_v61  ;;  %v1069_v13 = vsel %vm325_vm2, %v1063_v61, %v1065_v12 }
 0x29f   : > { %1410 = vrot.lane.b32.xlu1 %v2729_v62, %s3590_s8  ;;  %1623 = vmatpush1.bf16.msra.mxu0 %v1052_v26  ;;  %v1077_v7 = vmul.f32 %v1073_v38, %v1070_v17  ;;  %v2991_v9 = vmul.f32 %v1456_v40, %v1070_v17  ;;  %v3000_v33 = vmul.f32 %v1457_v42, %v1069_v13 }
 0x2a0   : > { %1663 = vmatprep.subr.bf16.mxu1 %v1055_v4  ;;  %v1085_v51 = vpop.permute.xlu0 %1084 }
 0x2a1   : > { %1664 = vmatpush1.bf16.msra.mxu1 %v1054_v41  ;;  %v1067_v35 = vpop.permute.xlu1 %1066 }
 0x2a2   : > { %v1068_v18 = vsel %vm325_vm2, %v1065_v12, %v1067_v35  ;;  %v1071_v54 = vsel %vm325_vm2, %v1067_v35, %v2864_v24  ;;  %v1094_v24 = vld [vmem:[%s3532_s5 + $0x70] sm:$0xff]  ;;  %v1095_v12 = vld [vmem:[%s3532_s5 + $0x78] sm:$0xff]  ;;  %v1783_v35 = vcombine.high %v3026_v59, %v3026_v59  ;;  %vm3600_vm2 = vmmov %vm3598_vm0 }
 0x2a3   : > { %v1076_v57 = vmul.f32 %v1072_v56, %v1071_v54  ;;  %v1079_v30 = vmul.f32 %v1075_v60, %v1068_v18  ;;  %v3015_v15 = vmul.f32 %v1458_v6, %v1068_v18  ;;  %v3031_v31 = vmul.f32 %v1459_v22, %v1071_v54  ;;  %v1191_v60 = vld [vmem:[%s3532_s5 + $0xf8] sm:$0xff] }
 0x2a4   : > { %v2966_v46 = vpop.permute.xlu0 %1108  ;;  %1654 = vmatprep.mubr.bf16.mxu0 %v1783_v35  ;;  %1695 = vmatprep.mubr.bf16.mxu1 %v1783_v35 }
 0x2a5   : > { %v1083_v37 = vpop.permute.xlu1 %1082 }
 0x2a6   : > { %v1089_v19 = vsel %vm346_vm3, %v1083_v37, %v1085_v51  ;;  %v1090_v1 = vsel %vm346_vm3, %v1081_v21, %v1083_v37  ;;  %v1480_v37 = vld [vmem:[%s3532_s5 + $0x2c0] sm:$0xff] }
 0x2a7   : > { %v1097_v45 = vmul.f32 %v1093_v63, %v1090_v1  ;;  %v3005_v14 = vmul.f32 %v1464_v25, %v1090_v1  ;;  %v3007_v44 = vmul.f32 %v1465_v47, %v1089_v19  ;;  %v1098_v61 = vmul.f32 %v1094_v24, %v1089_v19  ;;  %v1141_v24 = vld [vmem:[%s3532_s5 + $0xa8] sm:$0xff] }
 0x2a8   : > { %v1113_v43 = vpop.permute.xlu0 %1112  ;;  %v1078_v63 = vmul.f32 %v1074_v32, %v1069_v13  ;;  %v1121_v13 = vld [vmem:[%s3532_s5 + $0x88] sm:$0xff] }
 0x2a9   : > { %v1087_v28 = vpop.permute.xlu1 %1086  ;;  %v1101_v36 = vpack.c.bf16 %v1097_v45, %v1077_v7  ;;  %v1481_v7 = vld [vmem:[%s3532_s5 + $0x2c8] sm:$0xff]  ;;  %v1488_v45 = vld [vmem:[%s3532_s5 + $0x2e0] sm:$0xff]  ;;  %v3604_v5 = vpack.c.bf16 %v3007_v44, %v3000_v33 }
 0x2aa   : > { %v1088_v4 = vsel %vm346_vm3, %v1085_v51, %v1087_v28  ;;  %v1091_v41 = vsel %vm346_vm3, %v1087_v28, %v1081_v21  ;;  %v1102_v6 = vpack.c.bf16 %v1098_v61, %v1078_v63  ;;  %v1140_v63 = vld [vmem:[%s3532_s5 + $0xa0] sm:$0xff]  ;;  %vm3601_vm3 = vmmov %vm3598_vm0 }
 0x2ab   : > { %v1096_v38 = vmul.f32 %v1092_v39, %v1091_v41  ;;  %v1099_v40 = vmul.f32 %v1095_v12, %v1088_v4  ;;  %v3043_v42 = vmul.f32 %v1466_v3, %v1088_v4  ;;  %v3045_v17 = vmul.f32 %v1467_v11, %v1091_v41  ;;  %1624 = vmatprep.subr.bf16.mxu0 %v1101_v36  ;;  %v1489_v39 = vld [vmem:[%s3532_s5 + $0x2e8] sm:$0xff]  ;;  %v1120_v12 = vld [vmem:[%s3532_s5 + $0x80] sm:$0xff]  ;;  %v1482_v36 = vld [vmem:[%s3532_s5 + $0x2d0] sm:$0xff] }
 0x2ac   : > { %v1129_v25 = vpop.permute.xlu0 %1128 }
 0x2ad   : > { %v1100_v47 = vpack.c.bf16 %v1096_v38, %v1076_v57  ;;  %v1111_v56 = vpop.permute.xlu1 %1110  ;;  %v1103_v21 = vpack.c.bf16 %v1099_v40, %v1079_v30  ;;  %v1123_v57 = vld [vmem:[%s3532_s5 + $0x98] sm:$0xff] }
 0x2ae   : > { %v1118_v22 = vsel %vm375_vm4, %v2966_v46, %v1111_v56  ;;  %v1117_v19 = vsel %vm375_vm4, %v1111_v56, %v1113_v43 }
 0x2af   : > { %1625 = vmatpush1.bf16.msra.mxu0 %v1100_v47  ;;  %1665 = vmatprep.subr.bf16.mxu1 %v1103_v21  ;;  %v1125_v32 = vmul.f32 %v1121_v13, %v1118_v22  ;;  %v3087_v28 = vmul.f32 %v1480_v37, %v1118_v22  ;;  %v3096_v41 = vmul.f32 %v1481_v7, %v1117_v19  ;;  %v1491_v13 = vld [vmem:[%s3532_s5 + $0x2f8] sm:$0xff]  ;;  %v1122_v37 = vld [vmem:[%s3532_s5 + $0x90] sm:$0xff] }
 0x2b0   : > { %v1133_v18 = vpop.permute.xlu0 %1132  ;;  %1666 = vmatpush1.bf16.msra.mxu1 %v1102_v6  ;;  %v1143_v6 = vld [vmem:[%s3532_s5 + $0xb8] sm:$0xff] }
 0x2b1   : > { %v1115_v54 = vpop.permute.xlu1 %1114 }
 0x2b2   : > { %v1116_v30 = vsel %vm375_vm4, %v1113_v43, %v1115_v54  ;;  %v1119_v3 = vsel %vm375_vm4, %v1115_v54, %v2966_v46  ;;  %v1483_v46 = vld [vmem:[%s3532_s5 + $0x2d8] sm:$0xff]  ;;  %v1142_v43 = vld [vmem:[%s3532_s5 + $0xb0] sm:$0xff] }
 0x2b3   : > { %v1124_v47 = vmul.f32 %v1120_v12, %v1119_v3  ;;  %v1127_v56 = vmul.f32 %v1123_v57, %v1116_v30  ;;  %v1490_v54 = vld [vmem:[%s3532_s5 + $0x2f0] sm:$0xff]  ;;  %v3123_v7 = vmul.f32 %v1482_v36, %v1116_v30  ;;  %v3129_v12 = vmul.f32 %v1483_v46, %v1119_v3 }
 0x2b4   : > { %v3065_v1 = vpop.permute.xlu0 %1156 }
 0x2b5   : > { %v1131_v11 = vpop.permute.xlu1 %1130  ;;  %3592 = vst [vmem:[#allocation6_spill] sm:$0xff] %v3123_v7 }
 0x2b6   : > { %v1137_v61 = vsel %vm396_vm5, %v1131_v11, %v1133_v18  ;;  %v1138_v4 = vsel %vm396_vm5, %v1129_v25, %v1131_v11 }
 0x2b7   : > { %v1145_v35 = vmul.f32 %v1141_v24, %v1138_v4  ;;  %v3104_v38 = vmul.f32 %v1488_v45, %v1138_v4  ;;  %v3106_v40 = vmul.f32 %v1489_v39, %v1137_v61  ;;  %v1146_v57 = vmul.f32 %v1142_v43, %v1137_v61  ;;  %v1514_v39 = vld [vmem:[%s3532_s5 + $0x330] sm:$0xff] }
 0x2b8   : > { %v1161_v21 = vpop.permute.xlu0 %1160 }
 0x2b9   : > { %v1135_v24 = vpop.permute.xlu1 %1134  ;;  %v1149_v45 = vpack.c.bf16 %v1145_v35, %v1125_v32  ;;  %v1126_v32 = vmul.f32 %v1122_v37, %v1117_v19  ;;  %v1169_v19 = vld [vmem:[%s3532_s5 + $0xc8] sm:$0xff]  ;;  %v1512_v37 = vld [vmem:[%s3532_s5 + $0x320] sm:$0xff] }
 0x2ba   : > { %v1136_v11 = vsel %vm396_vm5, %v1133_v18, %v1135_v24  ;;  %v1139_v4 = vsel %vm396_vm5, %v1135_v24, %v1129_v25  ;;  %v1168_v24 = vld [vmem:[%s3532_s5 + $0xc0] sm:$0xff] }
 0x2bb   : > { %v1144_v29 = vmul.f32 %v1140_v63, %v1139_v4  ;;  %v1147_v30 = vmul.f32 %v1143_v6, %v1136_v11  ;;  %v3135_v36 = vmul.f32 %v1490_v54, %v1136_v11  ;;  %v3137_v51 = vmul.f32 %v1491_v13, %v1139_v4  ;;  %1626 = vmatprep.subr.bf16.mxu0 %v1149_v45  ;;  %v1189_v13 = vld [vmem:[%s3532_s5 + $0xe8] sm:$0xff]  ;;  %v1171_v45 = vld [vmem:[%s3532_s5 + $0xd8] sm:$0xff] }
 0x2bc   : > { %v1177_v35 = vpop.permute.xlu0 %1176  ;;  %v1150_v43 = vpack.c.bf16 %v1146_v57, %v1126_v32 }
 0x2bd   : > { %v1148_v22 = vpack.c.bf16 %v1144_v29, %v1124_v47  ;;  %v1159_v61 = vpop.permute.xlu1 %1158  ;;  %v1151_v46 = vpack.c.bf16 %v1147_v30, %v1127_v56  ;;  %v1504_v29 = vld [vmem:[%s3532_s5 + $0x300] sm:$0xff]  ;;  %v1505_v47 = vld [vmem:[%s3532_s5 + $0x308] sm:$0xff]  ;;  %v3613_v44 = vpack.c.bf16 %v3137_v51, %v3129_v12 }
 0x2be   : > { %v1166_v56 = vsel %vm425_vm6, %v3065_v1, %v1159_v61  ;;  %v1165_v6 = vsel %vm425_vm6, %v1159_v61, %v1161_v21  ;;  %v1506_v61 = vld [vmem:[%s3532_s5 + $0x310] sm:$0xff] }
 0x2bf   : > { %1627 = vmatpush1.bf16.msra.mxu0 %v1148_v22  ;;  %1667 = vmatprep.subr.bf16.mxu1 %v1151_v46  ;;  %v1513_v22 = vld [vmem:[%s3532_s5 + $0x328] sm:$0xff]  ;;  %v1173_v30 = vmul.f32 %v1169_v19, %v1166_v56  ;;  %v3179_v32 = vmul.f32 %v1504_v29, %v1166_v56  ;;  %v3188_v3 = vmul.f32 %v1505_v47, %v1165_v6  ;;  %v1188_v56 = vld [vmem:[%s3532_s5 + $0xe0] sm:$0xff] }
 0x2c0   : > { %v1181_v25 = vpop.permute.xlu0 %1180  ;;  %1668 = vmatpush1.bf16.msra.mxu1 %v1150_v43 }
 0x2c1   : > { %v1163_v63 = vpop.permute.xlu1 %1162 }
 0x2c2   : > { %v1164_v57 = vsel %vm425_vm6, %v1161_v21, %v1163_v63  ;;  %v1167_v11 = vsel %vm425_vm6, %v1163_v63, %v3065_v1  ;;  %v1507_v1 = vld [vmem:[%s3532_s5 + $0x318] sm:$0xff]  ;;  %v1190_v21 = vld [vmem:[%s3532_s5 + $0xf0] sm:$0xff] }
 0x2c3   : > { %v1175_v47 = vmul.f32 %v1171_v45, %v1164_v57  ;;  %v3221_v27 = vmul.f32 %v1507_v1, %v1167_v11 }
 0x2c4   : > { %v3157_v54 = vpop.permute.xlu0 %1204 }
 0x2c5   : > { %v1179_v4 = vpop.permute.xlu1 %1178  ;;  %3594 = vst [vmem:[#allocation3_spill] sm:$0xff] %v3221_v27 }
 0x2c6   : > { %v1185_v46 = vsel %vm446_vm7, %v1179_v4, %v1181_v25  ;;  %v1186_v43 = vsel %vm446_vm7, %v1177_v35, %v1179_v4  ;;  %v1172_v4 = vmul.f32 %v1168_v24, %v1167_v11 }
 0x2c7   : > { %v1193_v63 = vmul.f32 %v1189_v13, %v1186_v43  ;;  %v3196_v19 = vmul.f32 %v1512_v37, %v1186_v43  ;;  %v3198_v29 = vmul.f32 %v1513_v22, %v1185_v46  ;;  %v1515_v13 = vld [vmem:[%s3532_s5 + $0x338] sm:$0xff]  ;;  %v1170_v37 = vld [vmem:[%s3532_s5 + $0xd0] sm:$0xff]  ;;  %v3215_v22 = vmul.f32 %v1506_v61, %v1164_v57 }
 0x2c8   : > { %v1209_v18 = vpop.permute.xlu0 %1208  ;;  %v1194_v8 = vmul.f32 %v1190_v21, %v1185_v46 }
 0x2c9   : > { %3593 = vst [vmem:[#allocation5_spill] sm:$0xff] %v3215_v22  ;;  %v1183_v45 = vpop.permute.xlu1 %1182  ;;  %v1197_v43 = vpack.c.bf16 %v1193_v63, %v1173_v30  ;;  %v1174_v30 = vmul.f32 %v1170_v37, %v1165_v6 }
 0x2ca   : > { %v1184_v26 = vsel %vm446_vm7, %v1181_v25, %v1183_v45  ;;  %v1187_v10 = vsel %vm446_vm7, %v1183_v45, %v1177_v35  ;;  %v1237_v35 = vld [vmem:[%s3532_s5 + $0x128] sm:$0xff] }
 0x2cb   : > { %v1192_v23 = vmul.f32 %v1188_v56, %v1187_v10  ;;  %v1195_v57 = vmul.f32 %v1191_v60, %v1184_v26  ;;  %v3227_v61 = vmul.f32 %v1514_v39, %v1184_v26  ;;  %v3229_v59 = vmul.f32 %v1515_v13, %v1187_v10  ;;  %1628 = vmatprep.subr.bf16.mxu0 %v1197_v43  ;;  %v1217_v10 = vld [vmem:[%s3532_s5 + $0x108] sm:$0xff] }
 0x2cc   : > { %v1225_v63 = vpop.permute.xlu0 %1224  ;;  %v1198_v21 = vpack.c.bf16 %v1194_v8, %v1174_v30  ;;  %v1236_v30 = vld [vmem:[%s3532_s5 + $0x120] sm:$0xff] }
 0x2cd   : > { %3595 = vst [vmem:[#allocation7_spill] sm:$0xff] %v3227_v61  ;;  %3596 = vst [vmem:[#allocation8_spill] sm:$0xff] %v3229_v59  ;;  %v1196_v24 = vpack.c.bf16 %v1192_v23, %v1172_v4  ;;  %v1207_v46 = vpop.permute.xlu1 %1206  ;;  %v1199_v1 = vpack.c.bf16 %v1195_v57, %v1175_v47  ;;  %v1216_v4 = vld [vmem:[%s3532_s5 + $0x100] sm:$0xff]  ;;  %v1238_v47 = vld [vmem:[%s3532_s5 + $0x130] sm:$0xff] }
 0x2ce   : > { %v3241_v23 = vsel %vm475_vm8, %v3157_v54, %v1207_v46  ;;  %v3619_v12 = vld [vmem:[#allocation3_spill] sm:$0xff] }
 0x2cf   : > { %1629 = vmatpush1.bf16.msra.mxu0 %v1196_v24  ;;  %1669 = vmatprep.subr.bf16.mxu1 %v1199_v1  ;;  %v1221_v56 = vmul.f32 %v1217_v10, %v3241_v23  ;;  %v1219_v24 = vld [vmem:[%s3532_s5 + $0x118] sm:$0xff]  ;;  %v3280_v10 = vsel %vm475_vm8, %v1207_v46, %v1209_v18 }
 0x2d0   : > { %v1229_v60 = vpop.permute.xlu0 %1228  ;;  %1670 = vmatpush1.bf16.msra.mxu1 %v1198_v21  ;;  %v1239_v1 = vld [vmem:[%s3532_s5 + $0x138] sm:$0xff]  ;;  %v1218_v21 = vld [vmem:[%s3532_s5 + $0x110] sm:$0xff] }
 0x2d1   : > { %v1211_v26 = vpop.permute.xlu1 %1210  ;;  %v1222_v61 = vmul.f32 %v1218_v21, %v3280_v10  ;;  %v1267_v21 = vld [vmem:[%s3532_s5 + $0x158] sm:$0xff] }
 0x2d2   : > { %v3262_v45 = vsel %vm475_vm8, %v1209_v18, %v1211_v26  ;;  %v3267_v43 = vsel %vm475_vm8, %v1211_v26, %v3157_v54 }
 0x2d3   : > { %3597 = vst [vmem:[#allocation9_spill] sm:$0xff] %v3262_v45  ;;  %v1220_v11 = vmul.f32 %v1216_v4, %v3267_v43  ;;  %v1223_v25 = vmul.f32 %v1219_v24, %v3262_v45  ;;  %v1286_v24 = vld [vmem:[%s3532_s5 + $0x170] sm:$0xff] }
 0x2d4   : > { %v1253_v39 = vpop.permute.xlu0 %1252  ;;  %v3618_v51 = vld [vmem:[#allocation8_spill] sm:$0xff] }
 0x2d5   : > { %v1227_v8 = vpop.permute.xlu1 %1226 }
 0x2d6   : > { %v1234_v6 = vsel %vm496_vm9, %v1225_v63, %v1227_v8  ;;  %v1233_v13 = vsel %vm496_vm9, %v1227_v8, %v1229_v60 }
 0x2d7   : > { %v1241_v37 = vmul.f32 %v1237_v35, %v1234_v6  ;;  %v1242_v26 = vmul.f32 %v1238_v47, %v1233_v13 }
 0x2d8   : > { %v1257_v57 = vpop.permute.xlu0 %1256 }
 0x2d9   : > { %v1231_v35 = vpop.permute.xlu1 %1230  ;;  %v1245_v54 = vpack.c.bf16 %v1241_v37, %v1221_v56  ;;  %v1246_v47 = vpack.c.bf16 %v1242_v26, %v1222_v61 }
 0x2da   : > { %v1232_v8 = vsel %vm496_vm9, %v1229_v60, %v1231_v35  ;;  %v1235_v6 = vsel %vm496_vm9, %v1231_v35, %v1225_v63  ;;  %v1265_v63 = vld [vmem:[%s3532_s5 + $0x148] sm:$0xff] }
 0x2db   : > { %v1240_v58 = vmul.f32 %v1236_v30, %v1235_v6  ;;  %v1243_v22 = vmul.f32 %v1239_v1, %v1232_v8  ;;  %1630 = vmatprep.subr.bf16.mxu0 %v1245_v54  ;;  %v1284_v8 = vld [vmem:[%s3532_s5 + $0x160] sm:$0xff]  ;;  %v1287_v6 = vld [vmem:[%s3532_s5 + $0x178] sm:$0xff] }
 0x2dc   : > { %v1273_v18 = vpop.permute.xlu0 %1272 }
 0x2dd   : > { %v1244_v46 = vpack.c.bf16 %v1240_v58, %v1220_v11  ;;  %v1255_v27 = vpop.permute.xlu1 %1254  ;;  %v1247_v56 = vpack.c.bf16 %v1243_v22, %v1223_v25  ;;  %v1285_v58 = vld [vmem:[%s3532_s5 + $0x168] sm:$0xff]  ;;  %v1264_v25 = vld [vmem:[%s3532_s5 + $0x140] sm:$0xff] }
 0x2de   : > { %v1262_v4 = vsel %vm525_vm10, %v1253_v39, %v1255_v27 }
 0x2df   : > { %1631 = vmatpush1.bf16.msra.mxu0 %v1244_v46  ;;  %1671 = vmatprep.subr.bf16.mxu1 %v1247_v56  ;;  %v1269_v61 = vmul.f32 %v1265_v63, %v1262_v4  ;;  %v1266_v46 = vld [vmem:[%s3532_s5 + $0x150] sm:$0xff]  ;;  %v1261_v56 = vsel %vm525_vm10, %v1255_v27, %v1257_v57  ;;  %v1313_v27 = vld [vmem:[%s3532_s5 + $0x188] sm:$0xff] }
 0x2e0   : > { %1672 = vmatpush1.bf16.msra.mxu1 %v1246_v47  ;;  %v1277_v60 = vpop.permute.xlu0 %1276  ;;  %v1270_v59 = vmul.f32 %v1266_v46, %v1261_v56  ;;  %v1322_v46 = vld [vmem:[%s3532_s5 + $0x1b0] sm:$0xff] }
 0x2e1   : > { %v1259_v13 = vpop.permute.xlu1 %1258 }
 0x2e2   : > { %v1260_v35 = vsel %vm525_vm10, %v1257_v57, %v1259_v13  ;;  %v1263_v54 = vsel %vm525_vm10, %v1259_v13, %v1253_v39  ;;  %v1321_v57 = vld [vmem:[%s3532_s5 + $0x1a8] sm:$0xff] }
 0x2e4   : > { %v1301_v37 = vpop.permute.xlu0 %1300 }
 0x2e5   : > { %v1275_v11 = vpop.permute.xlu1 %1274 }
 0x2e6   : > { %v1282_v22 = vsel %vm546_vm11, %v1273_v18, %v1275_v11  ;;  %v1281_v30 = vsel %vm546_vm11, %v1275_v11, %v1277_v60  ;;  %v1271_v11 = vmul.f32 %v1267_v21, %v1260_v35  ;;  %v1320_v35 = vld [vmem:[%s3532_s5 + $0x1a0] sm:$0xff] }
 0x2e7   : > { %v1289_v1 = vmul.f32 %v1285_v58, %v1282_v22  ;;  %v1290_v4 = vmul.f32 %v1286_v24, %v1281_v30  ;;  %v1268_v58 = vmul.f32 %v1264_v25, %v1263_v54  ;;  %v1314_v25 = vld [vmem:[%s3532_s5 + $0x190] sm:$0xff]  ;;  %v1312_v54 = vld [vmem:[%s3532_s5 + $0x180] sm:$0xff] }
 0x2e8   : > { %v1305_v26 = vpop.permute.xlu0 %1304 }
 0x2e9   : > { %v1279_v47 = vpop.permute.xlu1 %1278  ;;  %v1293_v63 = vpack.c.bf16 %v1289_v1, %v1269_v61  ;;  %v1294_v30 = vpack.c.bf16 %v1290_v4, %v1270_v59 }
 0x2ea   : > { %v1280_v39 = vsel %vm546_vm11, %v1277_v60, %v1279_v47  ;;  %v1283_v13 = vsel %vm546_vm11, %v1279_v47, %v1273_v18 }
 0x2eb   : > { %v1288_v22 = vmul.f32 %v1284_v8, %v1283_v13  ;;  %v1291_v45 = vmul.f32 %v1287_v6, %v1280_v39  ;;  %1632 = vmatprep.subr.bf16.mxu0 %v1293_v63  ;;  %v1315_v8 = vld [vmem:[%s3532_s5 + $0x198] sm:$0xff] }
 0x2ec   : > { %v1337_v7 = vpop.permute.xlu0 %1336  ;;  %v1323_v6 = vld [vmem:[%s3532_s5 + $0x1b8] sm:$0xff] }
 0x2ed   : > { %v1292_v61 = vpack.c.bf16 %v1288_v22, %v1268_v58  ;;  %v1303_v60 = vpop.permute.xlu1 %1302  ;;  %v1295_v24 = vpack.c.bf16 %v1291_v45, %v1271_v11  ;;  %v1325_v45 = vmul.f32 %v1321_v57, %v2723_v55  ;;  %v1324_v58 = vmul.f32 %v1320_v35, %v2717_v53  ;;  %v1349_v53 = vld [vmem:[%s3532_s5 + $0x1c8] sm:$0xff] }
 0x2ee   : > { %v1310_v18 = vsel %vm575_vm12, %v1301_v37, %v1303_v60  ;;  %v1309_v1 = vsel %vm575_vm12, %v1303_v60, %v1305_v26  ;;  %v1327_v11 = vmul.f32 %v1323_v6, %v2729_v62  ;;  %v1326_v22 = vmul.f32 %v1322_v46, %v2715_v50  ;;  %v1350_v6 = vld [vmem:[%s3532_s5 + $0x1d0] sm:$0xff] }
 0x2ef   : > { %v1317_v21 = vmul.f32 %v1313_v27, %v1310_v18  ;;  %1633 = vmatpush1.bf16.msra.mxu0 %v1292_v61  ;;  %1673 = vmatprep.subr.bf16.mxu1 %v1295_v24  ;;  %v1318_v47 = vmul.f32 %v1314_v25, %v1309_v1  ;;  %v1368_v25 = vld [vmem:[%s3532_s5 + $0x1e0] sm:$0xff]  ;;  %v1369_v1 = vld [vmem:[%s3532_s5 + $0x1e8] sm:$0xff] }
 0x2f0   : > { %1674 = vmatpush1.bf16.msra.mxu1 %v1294_v30  ;;  %v1341_v59 = vpop.permute.xlu0 %1340 }
 0x2f1   : > { %v1307_v56 = vpop.permute.xlu1 %1306  ;;  %v1329_v55 = vpack.c.bf16 %v1325_v45, %v1317_v21  ;;  %v1330_v24 = vpack.c.bf16 %v1326_v22, %v1318_v47 }
 0x2f2   : > { %v1308_v63 = vsel %vm575_vm12, %v1305_v26, %v1307_v56  ;;  %v1311_v4 = vsel %vm575_vm12, %v1307_v56, %v1301_v37  ;;  %v1348_v37 = vld [vmem:[%s3532_s5 + $0x1c0] sm:$0xff] }
 0x2f3   : > { %v1316_v39 = vmul.f32 %v1312_v54, %v1311_v4  ;;  %v1319_v13 = vmul.f32 %v1315_v8, %v1308_v63  ;;  %1634 = vmatprep.subr.bf16.mxu0 %v1329_v55  ;;  %v1351_v55 = vld [vmem:[%s3532_s5 + $0x1d8] sm:$0xff]  ;;  %v1370_v4 = vld [vmem:[%s3532_s5 + $0x1f0] sm:$0xff] }
 0x2f4   : > { %v1357_v27 = vpop.permute.xlu0 %1356 }
 0x2f5   : > { %v1328_v57 = vpack.c.bf16 %v1324_v58, %v1316_v39  ;;  %v1339_v61 = vpop.permute.xlu1 %1338  ;;  %v1331_v60 = vpack.c.bf16 %v1327_v11, %v1319_v13  ;;  %v1371_v39 = vld [vmem:[%s3532_s5 + $0x1f8] sm:$0xff] }
 0x2f6   : > { %v1345_v50 = vsel %vm612_vm14, %v1339_v61, %v1341_v59  ;;  %v1346_v62 = vsel %vm612_vm14, %v1337_v7, %v1339_v61 }
 0x2f7   : > { %1635 = vmatpush1.bf16.msra.mxu0 %v1328_v57  ;;  %1675 = vmatprep.subr.bf16.mxu1 %v1331_v60  ;;  %v1352_v54 = vmul.f32 %v1348_v37, %v1346_v62  ;;  %v1353_v8 = vmul.f32 %v1349_v53, %v1345_v50 }
 0x2f8   : > { %1676 = vmatpush1.bf16.msra.mxu1 %v1330_v24  ;;  %v1361_v26 = vpop.permute.xlu0 %1360 }
 0x2f9   : > { %v1343_v30 = vpop.permute.xlu1 %1342 }
 0x2fa   : > { %v1344_v47 = vsel %vm612_vm14, %v1341_v59, %v1343_v30  ;;  %v1347_v63 = vsel %vm612_vm14, %v1343_v30, %v1337_v7 }
 0x2fb   : > { %v1354_v61 = vmul.f32 %v1350_v6, %v1344_v47  ;;  %v1355_v7 = vmul.f32 %v1351_v55, %v1347_v63  ;;  %v1398_v55 = vld [vmem:[%s3532_s5 + $0x210] sm:$0xff] }
 0x2fc   : > { %v1385_v18 = vpop.permute.xlu0 %1384 }
 0x2fd   : > { %v1359_v21 = vpop.permute.xlu1 %1358 }
 0x2fe   : > { %v1365_v35 = vsel %vm3598_vm0, %v1359_v21, %v1361_v26  ;;  %v1366_v45 = vsel %vm3599_vm1, %v1357_v27, %v1359_v21  ;;  %v1416_v21 = vld [vmem:[%s3532_s5 + $0x220] sm:$0xff] }
 0x2ff   : > { %v1372_v46 = vmul.f32 %v1368_v25, %v1366_v45  ;;  %v1373_v56 = vmul.f32 %v1369_v1, %v1365_v35  ;;  %v1417_v35 = vld [vmem:[%s3532_s5 + $0x228] sm:$0xff] }
 0x300   : > { %v1389_v58 = vpop.permute.xlu0 %1388 }
 0x301   : > { %v1376_v13 = vpack.c.bf16 %v1372_v46, %v1352_v54  ;;  %v1363_v11 = vpop.permute.xlu1 %1362  ;;  %v1377_v22 = vpack.c.bf16 %v1373_v56, %v1353_v8 }
 0x302   : > { %v1364_v57 = vsel %vm3600_vm2, %v1361_v26, %v1363_v11  ;;  %v1367_v59 = vsel %vm3601_vm3, %v1363_v11, %v1357_v27  ;;  %v1396_v26 = vld [vmem:[%s3532_s5 + $0x200] sm:$0xff]  ;;  %v1397_v27 = vld [vmem:[%s3532_s5 + $0x208] sm:$0xff]  ;;  %v1418_v11 = vld [vmem:[%s3532_s5 + $0x230] sm:$0xff] }
 0x303   : > { %v1374_v60 = vmul.f32 %v1370_v4, %v1364_v57  ;;  %v1375_v24 = vmul.f32 %v1371_v39, %v1367_v59  ;;  %1636 = vmatprep.subr.bf16.mxu0 %v1377_v22  ;;  %v1399_v4 = vld [vmem:[%s3532_s5 + $0x218] sm:$0xff] }
 0x304   : > { %1637 = vmatpush1.bf16.msra.mxu0 %v1376_v13  ;;  %v1405_v50 = vpop.permute.xlu0 %1404  ;;  %v1419_v22 = vld [vmem:[%s3532_s5 + $0x238] sm:$0xff] }
 0x305   : > { %v1378_v30 = vpack.c.bf16 %v1374_v60, %v1354_v61  ;;  %v1387_v37 = vpop.permute.xlu1 %1386  ;;  %v1379_v53 = vpack.c.bf16 %v1375_v24, %v1355_v7 }
 0x306   : > { %v1393_v25 = vsel %vm662_vm13, %v1387_v37, %v1389_v58  ;;  %v1394_v1 = vsel %vm662_vm13, %v1385_v18, %v1387_v37 }
 0x307   : > { %1677 = vmatprep.subr.bf16.mxu1 %v1379_v53  ;;  %v1400_v46 = vmul.f32 %v1396_v26, %v1394_v1  ;;  %v1401_v56 = vmul.f32 %v1397_v27, %v1393_v25  ;;  %v3602_v53 = vpack.c.bf16 %v2906_v0, %v2899_v16  ;;  %v3603_v26 = vpack.c.bf16 %v2904_v2, %v2885_v52  ;;  %v1529_v16 = vld [vmem:[%s3532_s5 + $0x348] sm:$0xff]  ;;  %v3624_v27 = vld [vmem:[#allocation5_spill] sm:$0xff] }
 0x308   : > { %1678 = vmatpush1.bf16.msra.mxu1 %v1378_v30  ;;  %v1409_v45 = vpop.permute.xlu0 %1408  ;;  %v3606_v0 = vpack.c.bf16 %v3005_v14, %v2991_v9  ;;  %v3607_v52 = vpack.c.bf16 %v2940_v48, %v2928_v34  ;;  %v3608_v2 = vpack.c.bf16 %v3106_v40, %v3096_v41  ;;  %v1533_v33 = vmul.f32 %v1529_v16, %v3280_v10  ;;  %v1531_v9 = vld [vmem:[%s3532_s5 + $0x358] sm:$0xff] }
 0x309   : > { %v1391_v62 = vpop.permute.xlu1 %1390  ;;  %v3610_v34 = vpack.c.bf16 %v3104_v38, %v3087_v28  ;;  %v3611_v48 = vpack.c.bf16 %v3043_v42, %v3015_v15  ;;  %v3612_v14 = vpack.c.bf16 %v3198_v29, %v3188_v3  ;;  %v1535_v28 = vmul.f32 %v1531_v9, %v3267_v43  ;;  %v3616_v42 = vld [vmem:[#allocation6_spill] sm:$0xff] }
 0x30a   : > { %v1392_v39 = vsel %vm662_vm13, %v1389_v58, %v1391_v62  ;;  %v1395_v13 = vsel %vm662_vm13, %v1391_v62, %v1385_v18  ;;  %v3614_v41 = vmov 0.0   ;;  %v3615_v15 = vpack.c.bf16 %v3196_v19, %v3179_v32  ;;  %v3622_v32 = vld [vmem:[#allocation4_spill] sm:$0xff] }
 0x30b   : > { %v1402_v60 = vmul.f32 %v1398_v55, %v1392_v39  ;;  %v1403_v24 = vmul.f32 %v1399_v4, %v1395_v13  ;;  %v1537_v38 = vpack.c.bf16 %v3614_v41, %v1533_v33  ;;  %v3617_v40 = vpack.c.bf16 %v3135_v36, %v3616_v42  ;;  %v3623_v36 = vld [vmem:[#allocation7_spill] sm:$0xff]  ;;  %v1706_v39 = vld [vmem:[%s1906_s26 + $0x10] sm:$0xff] }
 0x30c   : > { %v3620_v3 = vpack.c.bf16 %v3618_v51, %v3619_v12  ;;  %v1539_v10 = vpack.c.bf16 %v3614_v41, %v1535_v28  ;;  %v1782_v19 = vcombine.low %v3622_v32, %v3622_v32  ;;  %v3625_v25 = vpack.c.bf16 %v3623_v36, %v3624_v27 }
 0x30d   : > { %v1407_v54 = vpop.permute.xlu1 %1406 }
 0x30e   : > { %v1413_v8 = vsel %vm683_vm15, %v1407_v54, %v1409_v45  ;;  %v1414_v6 = vsel %vm683_vm15, %v1405_v50, %v1407_v54 }
 0x30f   : > { %v1420_v47 = vmul.f32 %v1416_v21, %v1414_v6  ;;  %v1421_v63 = vmul.f32 %v1417_v35, %v1413_v8  ;;  %v1705_v6 = vld [vmem:[%s1906_s26 + $0x8] sm:$0xff] }
 0x311   : > { %v1424_v57 = vpack.c.bf16 %v1420_v47, %v1400_v46  ;;  %v1411_v59 = vpop.permute.xlu1 %1410  ;;  %v1425_v61 = vpack.c.bf16 %v1421_v63, %v1401_v56 }
 0x312   : > { %v1412_v7 = vsel %vm683_vm15, %v1409_v45, %v1411_v59  ;;  %v1415_v58 = vsel %vm683_vm15, %v1411_v59, %v1405_v50  ;;  %v3605_v50 = vpack.c.bf16 %v2942_v49, %v2934_v20  ;;  %v3609_v20 = vpack.c.bf16 %v3045_v17, %v3031_v31  ;;  %v1528_v49 = vld [vmem:[%s3532_s5 + $0x340] sm:$0xff]  ;;  %v1530_v17 = vld [vmem:[%s3532_s5 + $0x350] sm:$0xff] }
 0x313   : > { %v1422_v18 = vmul.f32 %v1418_v11, %v1412_v7  ;;  %v1423_v30 = vmul.f32 %v1419_v22, %v1415_v58  ;;  %1638 = vmatprep.subr.bf16.mxu0 %v1425_v61  ;;  %v1532_v31 = vmul.f32 %v1528_v49, %v3241_v23  ;;  %v3621_v23 = vld [vmem:[#allocation9_spill] sm:$0xff]  ;;  %v1704_v45 = vld [vmem:[%s1906_s26] sm:$0xff]  ;;  %v1707_v22 = vld [vmem:[%s1906_s26 + $0x18] sm:$0xff] }
 0x314   : > { %1639 = vmatpush1.bf16.msra.mxu0 %v1424_v57  ;;  %v1534_v43 = vmul.f32 %v1530_v17, %v3621_v23 }
 0x315   : > { %v1426_v37 = vpack.c.bf16 %v1422_v18, %v1402_v60  ;;  %1640 = vmatprep.subr.bf16.mxu0 %v3602_v53  ;;  %v1427_v62 = vpack.c.bf16 %v1423_v30, %v1403_v24  ;;  %v1536_v29 = vpack.c.bf16 %v3614_v41, %v1532_v31 }
 0x316   : > { %v1538_v1 = vpack.c.bf16 %v3614_v41, %v1534_v43 }
 0x317   : > { %1679 = vmatprep.subr.bf16.mxu1 %v1427_v62 }
 0x318   : > { %1641 = vmatpush1.bf16.msra.mxu0 %v3603_v26  ;;  %1680 = vmatpush1.bf16.msra.mxu1 %v1426_v37 }
 0x319   : > { %1642 = vmatprep.subr.bf16.mxu0 %v3604_v5  ;;  %1681 = vmatprep.subr.bf16.mxu1 %v3605_v50  ;;  %v1613_v21 = vpop.permute.xlu0 %1612 }
 0x31c   : > { %1643 = vmatpush1.bf16.msra.mxu0 %v3606_v0  ;;  %1682 = vmatpush1.bf16.msra.mxu1 %v3607_v52 }
 0x31d   : > { %1644 = vmatprep.subr.bf16.mxu0 %v3608_v2  ;;  %1683 = vmatprep.subr.bf16.mxu1 %v3609_v20 }
 0x320   : > { %1645 = vmatpush1.bf16.msra.mxu0 %v3610_v34  ;;  %1684 = vmatpush1.bf16.msra.mxu1 %v3611_v48 }
 0x321   : > { %1646 = vmatprep.subr.bf16.mxu0 %v3612_v14  ;;  %1685 = vmatprep.subr.bf16.mxu1 %v3613_v44 }
 0x324   : > { %1647 = vmatpush1.bf16.msra.mxu0 %v3615_v15  ;;  %1686 = vmatpush1.bf16.msra.mxu1 %v3617_v40 }
 0x325   : > { %1648 = vmatprep.subr.bf16.mxu0 %v1537_v38  ;;  %1687 = vmatprep.subr.bf16.mxu1 %v3620_v3 }
 0x328   : > { %1649 = vmatpush1.bf16.msra.mxu0 %v1536_v29  ;;  %1688 = vmatpush1.bf16.msra.mxu1 %v3625_v25 }
 0x329   : > { %1689 = vmatprep.subr.bf16.mxu1 %v1539_v10 }
 0x32b   : > { %1655 = vmatmul.mubr.bf16.vlgmr.msra.gmra.mrb[4].mxu0 %v1782_v19 }
 0x32c   : > { %1690 = vmatpush1.bf16.msra.mxu1 %v1538_v1 }
 0x32f   : > { %1696 = vmatmul.mubr.bf16.vlgmr.msra.gmra.mrb[4].mxu1 %v1782_v19 }
 0x3fe   : > { %v1656_v35 = vpop.f32.mrb[4].mxu0 }
 0x3ff   : > { %v1657_v54 = vadd.f32 %v1656_v35, %v1613_v21  ;;  %v1658_v8 = vpop.f32.mrb[5].mxu0 }
 0x400   : > { %v1659_v46 = vadd.f32 %v1658_v8, %v1613_v21  ;;  %v1660_v56 = vpop.f32.mrb[6].mxu0 }
 0x401   : > { %v1708_v55 = vadd.f32 %v1704_v45, %v1657_v54  ;;  %v1661_v47 = vpop.f32.mrb[7].mxu0 }
 0x402   : > { %v1709_v63 = vadd.f32 %v1705_v6, %v1659_v46  ;;  %v1697_v4 = vpop.f32.mrb[4].mxu1 }
 0x403   : > { %1712 = vst [vmem:[%s251_s27] sm:$0xff] %v1708_v55  ;;  %v1698_v13 = vadd.f32 %v1697_v4, %v1613_v21  ;;  %v1699_v11 = vpop.f32.mrb[5].mxu1 }
 0x404   : > { %1713 = vst [vmem:[%s251_s27 + $0x8] sm:$0xff] %v1709_v63  ;;  %v1700_v57 = vadd.f32 %v1699_v11, %v1613_v21  ;;  %v1701_v59 = vpop.f32.mrb[6].mxu1 }
 0x405   : > { %v1710_v61 = vadd.f32 %v1706_v39, %v1698_v13  ;;  %v1702_v7 = vpop.f32.mrb[7].mxu1 }
 0x406   : > { %v1711_v58 = vadd.f32 %v1707_v22, %v1700_v57 }
 0x407   : > { %1714 = vst [vmem:[%s251_s27 + $0x10] sm:$0xff] %v1710_v61 }
 0x408   : > { %1715 = vst [vmem:[%s251_s27 + $0x18] sm:$0xff] %v1711_v58 }
 0x409 PF: > { %s16_s21 = sadd.s32 1, %s1834_s21  }
 0x40a   : > { %p13_p4 = scmp.ge.s32.totalorder %s16_s21, 4  }
 0x40c   :  { %15 = sbr.rel (!%p13_p4) target bundleno = 1 (0x1), region = 74 }

</bundles_post_ra>
